<compile_context>
chip_gen: v5e
topology: v5e:2x2
jax: 0.10.0
libtpu: 0.0.40
codegen_flags: <defaults>
</compile_context>

<pallas_src>
import functools

import jax
import jax.numpy as jnp
from jax.experimental import pallas as pl
from jax.experimental.pallas import tpu as pltpu


def _round_up(x, m):
    return (x + m - 1) // m * m


def _pdense_graph_kernel(adj_ref, x_ref, w_ref, b_ref, out_ref, h_ref,
                         *, tn, n_pad, adj_resident):
    """Fused PDenseGraph forward.

    Grid: (num_layers, n_pad // tn); both axes sequential ("arbitrary") because
    every row tile of layer l reads the FULL layer-(l-1) activations from the
    shared VMEM ping-pong scratch.

    adj_ref : (n_pad, n_pad) resident  OR  (tn, n_pad) streamed row tile
    x_ref   : (n_pad, f_pad)          padded input features (resident, bf16)
    w_ref   : (1, 2*f_pad, f_pad)     layer-l K-stacked [W_rel; W_root] (bf16)
    b_ref   : (1, 1, f_pad)           layer-l bias (f32)
    out_ref : (n_pad, f_pad)          full output block (written on last layer)
    h_ref   : (2*n_pad, f_pad)        activation ping-pong scratch (bf16)
    """
    l = pl.program_id(0)
    i = pl.program_id(1)
    num_layers = pl.num_programs(0)

    row0 = pl.multiple_of(i * tn, tn)
    cur = pl.multiple_of((l % 2) * n_pad, n_pad)          # layer-l write buffer
    prev = pl.multiple_of(((l + 1) % 2) * n_pad, n_pad)   # layer-(l-1) activations

    if adj_resident:
        adj_rows = adj_ref[pl.ds(row0, tn), :]
    else:
        adj_rows = adj_ref[...]

    dt = w_ref.dtype

    def layer_out(h_full, h_rows):
        # aggr='add':  agg = A[rows] @ h ;  z = agg @ W_rel + h_rows @ W_root + b
        # The two weight matmuls are fused into one K = 2*f_pad dot via the
        # K-stacked weight (fills the 256-wide MXU on v6e/v7x).
        agg = jnp.dot(adj_rows, h_full, preferred_element_type=jnp.float32)
        zin = jnp.concatenate([agg.astype(dt), h_rows], axis=-1)
        return (jnp.dot(zin, w_ref[0], preferred_element_type=jnp.float32)
                + b_ref[0])

    # Note on padding: rows r >= n may carry relu(bias) garbage in h_ref, but
    # padded adjacency COLUMNS are zero so they never contaminate real rows,
    # and the wrapper slices the output back to [:n, :n_classes].

    @pl.when(l == 0)
    def _():
        # First layer reads the input features directly (no seed copy).
        z = layer_out(x_ref[...], x_ref[pl.ds(row0, tn), :])
        h_ref[pl.ds(pl.multiple_of(cur + row0, tn), tn), :] = (
            jnp.maximum(z, 0.0).astype(h_ref.dtype))

    @pl.when((l > 0) & (l < num_layers - 1))
    def _():
        z = layer_out(h_ref[pl.ds(prev, n_pad), :],
                      h_ref[pl.ds(pl.multiple_of(prev + row0, tn), tn), :])
        h_ref[pl.ds(pl.multiple_of(cur + row0, tn), tn), :] = (
            jnp.maximum(z, 0.0).astype(h_ref.dtype))

    @pl.when(l == num_layers - 1)
    def _():
        # Output layer: tanh, store straight to the output block (no h write).
        z = layer_out(h_ref[pl.ds(prev, n_pad), :],
                      h_ref[pl.ds(pl.multiple_of(prev + row0, tn), tn), :])
        out_ref[pl.ds(row0, tn), :] = jnp.tanh(z).astype(out_ref.dtype)


def pdense_graph_forward(params, x, adj, *, mxu_dtype=jnp.bfloat16, tn=256):
    """Inference forward of PDenseGraph. x: [N, F_in], adj: [N, N] dense 0/1."""
    n, f_in = x.shape
    layer_params = [params["conv_input"], *params["layers"],
                    params["conv_output"]]
    num_layers = len(layer_params)
    assert num_layers >= 2
    feat_dims = [f_in] + [w.shape[1] for (w, _, _) in layer_params]
    n_classes = feat_dims[-1]

    # Lane-pad all feature dims to one common multiple of 128 so every layer
    # shares a single stacked weight tensor and all stores are lane-dense.
    f_pad = _round_up(max(feat_dims), 128)
    e = jnp.dtype(mxu_dtype).itemsize

    # ---- generation-aware VMEM budget & tiling -----------------------------
    try:
        vmem_cap = int(pltpu.get_tpu_info().vmem_capacity_bytes)
    except Exception:
        vmem_cap = 64 * 1024 * 1024            # v7x-sized conservative default
    vmem_limit = min(int(vmem_cap * 0.80), 100 * 1024 * 1024)
    budget = vmem_limit - 6 * 1024 * 1024      # headroom for compiler scratch

    def vmem_need(n_pad_, tn_, resident_):
        adj_b = (n_pad_ * n_pad_ if resident_ else tn_ * n_pad_) * e * 2
        x_b = n_pad_ * f_pad * e * 2
        w_b = 2 * f_pad * f_pad * e * 2
        b_b = f_pad * 4 * 2
        out_b = n_pad_ * f_pad * 4 * 2
        h_b = 2 * n_pad_ * f_pad * e
        return adj_b + x_b + w_b + b_b + out_b + h_b

    tn_req = max(128, _round_up(tn, 128))
    tn_req = min(tn_req, _round_up(n, 128))    # don't over-pad tiny graphs
    cands = [t for t in (512, 256, 128) if t <= tn_req] or [128]

    cfg = None
    for resident in (True, False):             # prefer resident adjacency
        for t in cands:                        # then the largest row tile
            npd = _round_up(n, t)
            if vmem_need(npd, t, resident) <= budget:
                cfg = (t, npd, resident)
                break
        if cfg is not None:
            break
    if cfg is None:
        # TODO(synk): huge-N fallback (adjacency-column K-split) not implemented.
        t = cands[-1]
        cfg = (t, _round_up(n, t), False)
    tn, n_pad, adj_resident = cfg

    # ---- host-side packing (zero padding is exact) -------------------------
    w_cat = jnp.zeros((num_layers, 2 * f_pad, f_pad), jnp.float32)
    bias = jnp.zeros((num_layers, 1, f_pad), jnp.float32)
    for li, (w_rel, w_root, b) in enumerate(layer_params):
        fi, fo = w_rel.shape
        w_cat = w_cat.at[li, :fi, :fo].set(w_rel)                   # K-stack rel
        w_cat = w_cat.at[li, f_pad:f_pad + fi, :fo].set(w_root)     # then root
        bias = bias.at[li, 0, :fo].set(b)
    w_cat = w_cat.astype(mxu_dtype)

    # bf16 is exact for the 0/1 adjacency and halves its HBM traffic; all dots
    # accumulate in f32.  Pass mxu_dtype=jnp.float32 for full-precision runs.
    x_p = jnp.zeros((n_pad, f_pad), mxu_dtype).at[:n, :f_in].set(
        x.astype(mxu_dtype))
    adj_p = jnp.zeros((n_pad, n_pad), mxu_dtype).at[:n, :n].set(
        adj.astype(mxu_dtype))

    if adj_resident:
        adj_spec = pl.BlockSpec((n_pad, n_pad), lambda l, i: (0, 0))   # fetched once
    else:
        adj_spec = pl.BlockSpec((tn, n_pad), lambda l, i: (i, 0))      # streamed rows

    kernel = functools.partial(_pdense_graph_kernel, tn=tn, n_pad=n_pad,
                               adj_resident=adj_resident)
    out_pad = pl.pallas_call(
        kernel,
        out_shape=jax.ShapeDtypeStruct((n_pad, f_pad), jnp.float32),
        grid=(num_layers, n_pad // tn),
        in_specs=[
            adj_spec,                                                  # adjacency
            pl.BlockSpec((n_pad, f_pad), lambda l, i: (0, 0)),         # x (resident)
            pl.BlockSpec((1, 2 * f_pad, f_pad), lambda l, i: (l, 0, 0)),  # [W_rel;W_root]
            pl.BlockSpec((1, 1, f_pad), lambda l, i: (l, 0, 0)),       # bias[l]
        ],
        out_specs=pl.BlockSpec((n_pad, f_pad), lambda l, i: (0, 0)),
        scratch_shapes=[
            pltpu.VMEM((2 * n_pad, f_pad), mxu_dtype),   # activation ping-pong
        ],
        compiler_params=pltpu.CompilerParams(
            # Both axes sequential: each row tile of layer l consumes the full
            # layer-(l-1) activations from shared VMEM scratch, so the row axis
            # cannot be megacore-sharded in this fused formulation.
            dimension_semantics=("arbitrary", "arbitrary"),
            vmem_limit_bytes=vmem_limit,
        ),
    )(adj_p, x_p, w_cat, bias)

    return out_pad[:n, :n_classes]


def init_conv_params(key, fin, fout, scale):
    k1, k2, k3 = jax.random.split(key, 3)
    # Stored pre-transposed to [F_in, F_out] (PyTorch Linear weight is [out, in]).
    w_rel = jax.random.uniform(k1, (fin, fout), jnp.float32, -scale, scale)
    w_root = jax.random.uniform(k2, (fin, fout), jnp.float32, -scale, scale)
    b_rel = jax.random.uniform(k3, (fout,), jnp.float32, -scale, scale)
    return w_rel, w_root, b_rel


def init_pdense_graph(key, num_features, n_classes, num_hidden,
                      num_hidden_layers):
    keys = jax.random.split(key, num_hidden_layers + 2)
    # Demo init: scale ~ 1/fin keeps activations O(1) through the un-normalized
    # 'add' aggregation, so the bf16-vs-f32 comparison below is meaningful.
    return {
        "conv_input": init_conv_params(keys[0], num_features, num_hidden,
                                       1.0 / num_features),
        "layers": [init_conv_params(keys[1 + i], num_hidden, num_hidden,
                                    1.0 / num_hidden)
                   for i in range(num_hidden_layers)],
        "conv_output": init_conv_params(keys[-1], num_hidden, n_classes,
                                        1.0 / num_hidden),
    }


def _reference_forward(params, x, adj):
    """Pure-JAX f32 reference (module semantics)."""
    hp = jax.lax.Precision.HIGHEST

    def conv(h, p):
        w_rel, w_root, b = p
        return (jnp.dot(jnp.dot(adj, h, precision=hp), w_rel, precision=hp)
                + jnp.dot(h, w_root, precision=hp) + b[None, :])

    h = jnp.maximum(conv(x, params["conv_input"]), 0.0)
    for p in params["layers"]:
        h = jnp.maximum(conv(h, p), 0.0)
    return jnp.tanh(conv(h, params["conv_output"]))


def _reference_forward_mxu(params, x, adj, mxu_dtype):
    """Pure-JAX reference replicating the kernel's cast points (bf16 in, f32 acc)."""
    layer_params = [params["conv_input"], *params["layers"],
                    params["conv_output"]]
    adj_c = adj.astype(mxu_dtype)
    h = x.astype(mxu_dtype)
    out = None
    for li, (w_rel, w_root, b) in enumerate(layer_params):
        agg = jnp.dot(adj_c, h,
                      preferred_element_type=jnp.float32).astype(mxu_dtype)
        w_cat = jnp.concatenate([w_rel, w_root], axis=0).astype(mxu_dtype)
        z = (jnp.dot(jnp.concatenate([agg, h], axis=-1), w_cat,
                     preferred_element_type=jnp.float32) + b[None, :])
        last = li == len(layer_params) - 1
        act = jnp.tanh(z) if last else jnp.maximum(z, 0.0)
        h = act.astype(mxu_dtype)
        out = act
    return out


if __name__ == "__main__":
    N = 64
    NUM_FEATURES = 16
    NUM_HIDDEN = 32
    N_CLASSES = 8
    NUM_HIDDEN_LAYERS = 2

    key = jax.random.PRNGKey(0)
    kx, ka, kp = jax.random.split(key, 3)

    x = jax.random.normal(kx, (N, NUM_FEATURES), jnp.float32)
    # The module feeds `edge_index` straight into DenseGraphConv, which expects
    # a dense adjacency matrix -> use a dense 0/1 adjacency here.
    adj = jax.random.bernoulli(ka, p=0.3, shape=(N, N)).astype(jnp.float32)

    params = init_pdense_graph(kp, NUM_FEATURES, N_CLASSES, NUM_HIDDEN,
                               NUM_HIDDEN_LAYERS)

    fwd = jax.jit(functools.partial(pdense_graph_forward,
                                    mxu_dtype=jnp.bfloat16))
    out = jax.block_until_ready(fwd(params, x, adj))
    assert out.shape == (N, N_CLASSES)
    assert bool(jnp.all(jnp.isfinite(out)))

    # Exactness check vs. a pure-JAX reference using the kernel's own
    # bf16-in / f32-accumulate numerics (differences = accumulation order only).
    ref_matched = _reference_forward_mxu(params, x, adj, jnp.bfloat16)
    assert jnp.allclose(out, ref_matched, atol=2e-3, rtol=2e-3), (
        float(jnp.max(jnp.abs(out - ref_matched))))

    # Sanity check vs. the full-f32 module semantics (bf16 drift only).
    ref_f32 = _reference_forward(params, x, adj)
    assert jnp.allclose(out, ref_f32, atol=5e-2), (
        float(jnp.max(jnp.abs(out - ref_f32))))

    print("KERNEL_OK")
</pallas_src>

<mosaic_0001>
module attributes {stable_mosaic.version = 11 : i64} {
  func.func @_pdense_graph_kernel(%arg0: i32, %arg1: i32, %arg2: memref<128x128xbf16, #tpu.memory_space<vmem>>, %arg3: memref<128x128xbf16, #tpu.memory_space<vmem>>, %arg4: memref<1x256x128xbf16, #tpu.memory_space<vmem>>, %arg5: memref<1x1x128xf32, #tpu.memory_space<vmem>>, %arg6: memref<128x128xf32, #tpu.memory_space<vmem>>, %arg7: memref<256x128xbf16, #tpu.memory_space<vmem>>) attributes {dimension_semantics = [#tpu.dimension_semantics<arbitrary>, #tpu.dimension_semantics<arbitrary>], iteration_bounds = array<i64: 4, 1>, scalar_prefetch = 0 : i64, scratch_operands = 1 : i64, tpu.core_type = #tpu.core_type<tc>, window_params = [{pipeline_mode = #tpu.pipeline_mode<synchronous>, transform_indices = @transform_0, window_bounds = array<i64: 128, 128>}, {pipeline_mode = #tpu.pipeline_mode<synchronous>, transform_indices = @transform_1, window_bounds = array<i64: 128, 128>}, {transform_indices = @transform_2, window_bounds = array<i64: 1, 256, 128>}, {transform_indices = @transform_3, window_bounds = array<i64: 1, 1, 128>}, {pipeline_mode = #tpu.pipeline_mode<synchronous>, transform_indices = @transform_4, window_bounds = array<i64: 128, 128>}]} {
    %c128_i32 = arith.constant 128 : i32
    %0 = arith.muli %arg1, %c128_i32 : i32
    %1 = tpu.assume_multiple %0, 128 : i32
    %c2_i32 = arith.constant 2 : i32
    %c0_i32 = arith.constant 0 : i32
    %2 = arith.cmpi eq, %c2_i32, %c0_i32 : i32
    %c1_i32 = arith.constant 1 : i32
    %3 = arith.select %2, %c1_i32, %c2_i32 : i32
    %4 = arith.remsi %arg0, %3 : i32
    %c0_i32_0 = arith.constant 0 : i32
    %5 = arith.cmpi ne, %4, %c0_i32_0 : i32
    %c0_i32_1 = arith.constant 0 : i32
    %6 = arith.cmpi slt, %4, %c0_i32_1 : i32
    %c0_i32_2 = arith.constant 0 : i32
    %7 = arith.cmpi slt, %3, %c0_i32_2 : i32
    %8 = arith.xori %6, %7 : i1
    %9 = arith.andi %8, %5 : i1
    %10 = arith.addi %4, %3 : i32
    %11 = arith.select %9, %10, %4 : i32
    %c128_i32_3 = arith.constant 128 : i32
    %12 = arith.muli %11, %c128_i32_3 : i32
    %13 = tpu.assume_multiple %12, 128 : i32
    %c1_i32_4 = arith.constant 1 : i32
    %14 = arith.addi %arg0, %c1_i32_4 : i32
    %c2_i32_5 = arith.constant 2 : i32
    %c0_i32_6 = arith.constant 0 : i32
    %15 = arith.cmpi eq, %c2_i32_5, %c0_i32_6 : i32
    %c1_i32_7 = arith.constant 1 : i32
    %16 = arith.select %15, %c1_i32_7, %c2_i32_5 : i32
    %17 = arith.remsi %14, %16 : i32
    %c0_i32_8 = arith.constant 0 : i32
    %18 = arith.cmpi ne, %17, %c0_i32_8 : i32
    %c0_i32_9 = arith.constant 0 : i32
    %19 = arith.cmpi slt, %17, %c0_i32_9 : i32
    %c0_i32_10 = arith.constant 0 : i32
    %20 = arith.cmpi slt, %16, %c0_i32_10 : i32
    %21 = arith.xori %19, %20 : i1
    %22 = arith.andi %21, %18 : i1
    %23 = arith.addi %17, %16 : i32
    %24 = arith.select %22, %23, %17 : i32
    %c128_i32_11 = arith.constant 128 : i32
    %25 = arith.muli %24, %c128_i32_11 : i32
    %26 = tpu.assume_multiple %25, 128 : i32
    %27 = arith.index_cast %1 : i32 to index
    %c0 = arith.constant 0 : index
    %28 = vector.load %arg2[%27, %c0] : memref<128x128xbf16, #tpu.memory_space<vmem>>, vector<128x128xbf16>
    %c0_i32_12 = arith.constant 0 : i32
    %29 = arith.cmpi eq, %arg0, %c0_i32_12 : i32
    %30 = arith.extui %29 : i1 to i32
    %c0_i32_13 = arith.constant 0 : i32
    %31 = arith.cmpi ne, %30, %c0_i32_13 : i32
    scf.if %31 {
      %c0_18 = arith.constant 0 : index
      %c0_19 = arith.constant 0 : index
      %40 = vector.load %arg3[%c0_18, %c0_19] : memref<128x128xbf16, #tpu.memory_space<vmem>>, vector<128x128xbf16>
      %41 = arith.index_cast %1 : i32 to index
      %c0_20 = arith.constant 0 : index
      %42 = vector.load %arg3[%41, %c0_20] : memref<128x128xbf16, #tpu.memory_space<vmem>>, vector<128x128xbf16>
      %cst = arith.constant dense<0.000000e+00> : vector<128x128xf32>
      %43 = tpu.matmul %28, %40, %cst {dimension_numbers = #tpu.dot_dimension_numbers<[1], [0], [0], [1], [0, 0, 1, 1], [], []>} : vector<128x128xbf16>, vector<128x128xbf16>, vector<128x128xf32> -> vector<128x128xf32>
      %44 = arith.truncf %43 : vector<128x128xf32> to vector<128x128xbf16>
      %45 = tpu.concatenate %44, %42 in 1 : vector<128x128xbf16>, vector<128x128xbf16> -> vector<128x256xbf16>
      %c0_21 = arith.constant 0 : index
      %c0_22 = arith.constant 0 : index
      %c0_23 = arith.constant 0 : index
      %46 = vector.load %arg4[%c0_21, %c0_22, %c0_23] : memref<1x256x128xbf16, #tpu.memory_space<vmem>>, vector<1x256x128xbf16>
      %47 = vector.shape_cast %46 : vector<1x256x128xbf16> to vector<256x128xbf16>
      %cst_24 = arith.constant dense<0.000000e+00> : vector<128x128xf32>
      %48 = tpu.matmul %45, %47, %cst_24 {dimension_numbers = #tpu.dot_dimension_numbers<[1], [0], [0], [1], [0, 0, 1, 1], [], []>} : vector<128x256xbf16>, vector<256x128xbf16>, vector<128x128xf32> -> vector<128x128xf32>
      %c0_25 = arith.constant 0 : index
      %c0_26 = arith.constant 0 : index
      %c0_27 = arith.constant 0 : index
      %49 = vector.load %arg5[%c0_25, %c0_26, %c0_27] : memref<1x1x128xf32, #tpu.memory_space<vmem>>, vector<1x1x128xf32>
      %50 = vector.shape_cast %49 : vector<1x1x128xf32> to vector<1x128xf32>
      %51 = vector.broadcast %50 : vector<1x128xf32> to vector<128x128xf32>
      %52 = arith.addf %48, %51 : vector<128x128xf32>
      %cst_28 = arith.constant 0.000000e+00 : f32
      %53 = vector.broadcast %cst_28 : f32 to vector<128x128xf32>
      %54 = arith.maximumf %52, %53 : vector<128x128xf32>
      %55 = arith.truncf %54 : vector<128x128xf32> to vector<128x128xbf16>
      %56 = arith.addi %13, %1 : i32
      %57 = tpu.assume_multiple %56, 128 : i32
      %58 = arith.index_cast %57 : i32 to index
      %c0_29 = arith.constant 0 : index
      %59 = vector.load %arg7[%58, %c0_29] : memref<256x128xbf16, #tpu.memory_space<vmem>>, vector<128x128xbf16>
      tpu.vector_store %arg7[%58, %c0_29], %55 {strides = array<i32>} : memref<256x128xbf16, #tpu.memory_space<vmem>>, vector<128x128xbf16>,
    } else {
    }
    %c0_i32_14 = arith.constant 0 : i32
    %32 = arith.cmpi sgt, %arg0, %c0_i32_14 : i32
    %c3_i32 = arith.constant 3 : i32
    %33 = arith.cmpi slt, %arg0, %c3_i32 : i32
    %34 = arith.andi %32, %33 : i1
    %35 = arith.extui %34 : i1 to i32
    %c0_i32_15 = arith.constant 0 : i32
    %36 = arith.cmpi ne, %35, %c0_i32_15 : i32
    scf.if %36 {
      %40 = arith.index_cast %26 : i32 to index
      %c0_18 = arith.constant 0 : index
      %41 = vector.load %arg7[%40, %c0_18] : memref<256x128xbf16, #tpu.memory_space<vmem>>, vector<128x128xbf16>
      %42 = arith.addi %26, %1 : i32
      %43 = tpu.assume_multiple %42, 128 : i32
      %44 = arith.index_cast %43 : i32 to index
      %c0_19 = arith.constant 0 : index
      %45 = vector.load %arg7[%44, %c0_19] : memref<256x128xbf16, #tpu.memory_space<vmem>>, vector<128x128xbf16>
      %cst = arith.constant dense<0.000000e+00> : vector<128x128xf32>
      %46 = tpu.matmul %28, %41, %cst {dimension_numbers = #tpu.dot_dimension_numbers<[1], [0], [0], [1], [0, 0, 1, 1], [], []>} : vector<128x128xbf16>, vector<128x128xbf16>, vector<128x128xf32> -> vector<128x128xf32>
      %47 = arith.truncf %46 : vector<128x128xf32> to vector<128x128xbf16>
      %48 = tpu.concatenate %47, %45 in 1 : vector<128x128xbf16>, vector<128x128xbf16> -> vector<128x256xbf16>
      %c0_20 = arith.constant 0 : index
      %c0_21 = arith.constant 0 : index
      %c0_22 = arith.constant 0 : index
      %49 = vector.load %arg4[%c0_20, %c0_21, %c0_22] : memref<1x256x128xbf16, #tpu.memory_space<vmem>>, vector<1x256x128xbf16>
      %50 = vector.shape_cast %49 : vector<1x256x128xbf16> to vector<256x128xbf16>
      %cst_23 = arith.constant dense<0.000000e+00> : vector<128x128xf32>
      %51 = tpu.matmul %48, %50, %cst_23 {dimension_numbers = #tpu.dot_dimension_numbers<[1], [0], [0], [1], [0, 0, 1, 1], [], []>} : vector<128x256xbf16>, vector<256x128xbf16>, vector<128x128xf32> -> vector<128x128xf32>
      %c0_24 = arith.constant 0 : index
      %c0_25 = arith.constant 0 : index
      %c0_26 = arith.constant 0 : index
      %52 = vector.load %arg5[%c0_24, %c0_25, %c0_26] : memref<1x1x128xf32, #tpu.memory_space<vmem>>, vector<1x1x128xf32>
      %53 = vector.shape_cast %52 : vector<1x1x128xf32> to vector<1x128xf32>
      %54 = vector.broadcast %53 : vector<1x128xf32> to vector<128x128xf32>
      %55 = arith.addf %51, %54 : vector<128x128xf32>
      %cst_27 = arith.constant 0.000000e+00 : f32
      %56 = vector.broadcast %cst_27 : f32 to vector<128x128xf32>
      %57 = arith.maximumf %55, %56 : vector<128x128xf32>
      %58 = arith.truncf %57 : vector<128x128xf32> to vector<128x128xbf16>
      %59 = arith.addi %13, %1 : i32
      %60 = tpu.assume_multiple %59, 128 : i32
      %61 = arith.index_cast %60 : i32 to index
      %c0_28 = arith.constant 0 : index
      %62 = vector.load %arg7[%61, %c0_28] : memref<256x128xbf16, #tpu.memory_space<vmem>>, vector<128x128xbf16>
      tpu.vector_store %arg7[%61, %c0_28], %58 {strides = array<i32>} : memref<256x128xbf16, #tpu.memory_space<vmem>>, vector<128x128xbf16>,
    } else {
    }
    %c3_i32_16 = arith.constant 3 : i32
    %37 = arith.cmpi eq, %arg0, %c3_i32_16 : i32
    %38 = arith.extui %37 : i1 to i32
    %c0_i32_17 = arith.constant 0 : i32
    %39 = arith.cmpi ne, %38, %c0_i32_17 : i32
    scf.if %39 {
      %40 = arith.index_cast %26 : i32 to index
      %c0_18 = arith.constant 0 : index
      %41 = vector.load %arg7[%40, %c0_18] : memref<256x128xbf16, #tpu.memory_space<vmem>>, vector<128x128xbf16>
      %42 = arith.addi %26, %1 : i32
      %43 = tpu.assume_multiple %42, 128 : i32
      %44 = arith.index_cast %43 : i32 to index
      %c0_19 = arith.constant 0 : index
      %45 = vector.load %arg7[%44, %c0_19] : memref<256x128xbf16, #tpu.memory_space<vmem>>, vector<128x128xbf16>
      %cst = arith.constant dense<0.000000e+00> : vector<128x128xf32>
      %46 = tpu.matmul %28, %41, %cst {dimension_numbers = #tpu.dot_dimension_numbers<[1], [0], [0], [1], [0, 0, 1, 1], [], []>} : vector<128x128xbf16>, vector<128x128xbf16>, vector<128x128xf32> -> vector<128x128xf32>
      %47 = arith.truncf %46 : vector<128x128xf32> to vector<128x128xbf16>
      %48 = tpu.concatenate %47, %45 in 1 : vector<128x128xbf16>, vector<128x128xbf16> -> vector<128x256xbf16>
      %c0_20 = arith.constant 0 : index
      %c0_21 = arith.constant 0 : index
      %c0_22 = arith.constant 0 : index
      %49 = vector.load %arg4[%c0_20, %c0_21, %c0_22] : memref<1x256x128xbf16, #tpu.memory_space<vmem>>, vector<1x256x128xbf16>
      %50 = vector.shape_cast %49 : vector<1x256x128xbf16> to vector<256x128xbf16>
      %cst_23 = arith.constant dense<0.000000e+00> : vector<128x128xf32>
      %51 = tpu.matmul %48, %50, %cst_23 {dimension_numbers = #tpu.dot_dimension_numbers<[1], [0], [0], [1], [0, 0, 1, 1], [], []>} : vector<128x256xbf16>, vector<256x128xbf16>, vector<128x128xf32> -> vector<128x128xf32>
      %c0_24 = arith.constant 0 : index
      %c0_25 = arith.constant 0 : index
      %c0_26 = arith.constant 0 : index
      %52 = vector.load %arg5[%c0_24, %c0_25, %c0_26] : memref<1x1x128xf32, #tpu.memory_space<vmem>>, vector<1x1x128xf32>
      %53 = vector.shape_cast %52 : vector<1x1x128xf32> to vector<1x128xf32>
      %54 = vector.broadcast %53 : vector<1x128xf32> to vector<128x128xf32>
      %55 = arith.addf %51, %54 : vector<128x128xf32>
      %56 = math.tanh %55 : vector<128x128xf32>
      %57 = arith.index_cast %1 : i32 to index
      %c0_27 = arith.constant 0 : index
      %58 = vector.load %arg6[%57, %c0_27] : memref<128x128xf32, #tpu.memory_space<vmem>>, vector<128x128xf32>
      tpu.vector_store %arg6[%57, %c0_27], %56 {strides = array<i32>} : memref<128x128xf32, #tpu.memory_space<vmem>>, vector<128x128xf32>,
    } else {
    }
    return
  }
  func.func @transform_0(%arg0: i32, %arg1: i32) -> (i32, i32) {
    %c0_i32 = arith.constant 0 : i32
    %c0_i32_0 = arith.constant 0 : i32
    %c0_i32_1 = arith.constant 0 : i32
    return %c0_i32, %c0_i32_0 : i32, i32
  }
  func.func @transform_1(%arg0: i32, %arg1: i32) -> (i32, i32) {
    %c0_i32 = arith.constant 0 : i32
    %c0_i32_0 = arith.constant 0 : i32
    %c0_i32_1 = arith.constant 0 : i32
    return %c0_i32, %c0_i32_0 : i32, i32
  }
  func.func @transform_2(%arg0: i32, %arg1: i32) -> (i32, i32, i32) {
    %c0_i32 = arith.constant 0 : i32
    %c0_i32_0 = arith.constant 0 : i32
    %c0_i32_1 = arith.constant 0 : i32
    return %arg0, %c0_i32, %c0_i32_0 : i32, i32, i32
  }
  func.func @transform_3(%arg0: i32, %arg1: i32) -> (i32, i32, i32) {
    %c0_i32 = arith.constant 0 : i32
    %c0_i32_0 = arith.constant 0 : i32
    %c0_i32_1 = arith.constant 0 : i32
    return %arg0, %c0_i32, %c0_i32_0 : i32, i32, i32
  }
  func.func @transform_4(%arg0: i32, %arg1: i32) -> (i32, i32) {
    %c0_i32 = arith.constant 0 : i32
    %c0_i32_0 = arith.constant 0 : i32
    %c0_i32_1 = arith.constant 0 : i32
    return %c0_i32, %c0_i32_0 : i32, i32
  }
}

</mosaic_0001>

<bundles_post_ra>
// kernel: pdense_graph_forward.1
= control target key start
LH: loop header
LB: loop body
LE: loop exit
PB: predicated region body
PF: predicated region fallthrough
CT: control target
= control target key end

     0   :  { %s2949_s15 = smov 0   ;;  %s2951_s16 = smov 0   ;;  %s3557_s0 = inlined_call_operand.vmem [shape: bf16[128,128], index: 0, kind: input, shape index: {}]   ;;  %s3558_s1 = inlined_call_operand.vmem [shape: bf16[128,128], index: 1, kind: input, shape index: {}]   ;;  %s3559_s2 = inlined_call_operand.vmem [shape: bf16[4,256,128], index: 2, kind: input, shape index: {}]   ;;  %s3560_s3 = inlined_call_operand.vmem [shape: f32[4,1,128], index: 3, kind: input, shape index: {}]   ;;  %s3561_s4 = inlined_call_operand.vmem [shape: f32[128,128], index: 4, kind: output, shape index: {}]  }
   0x1   :  { %s2953_s17 = smov 0  }
   0x2 LB: > { %s26_s18 = sadd.s32 1, %s2918_s16  ;;  %p2053_p0 = scmp.ge.s32.totalorder %s2922_s17, 1  ;;  %s2922_s17 = sphi %s2953_s17, %s14_s17   ;;  %s2918_s16 = sphi %s2951_s16, %s3563_s16   ;;  %s2914_s15 = sphi %s2949_s15, %s3562_s15  }
   0x3   : > { %p28_p1 = scmp.ge.s32.totalorder %s26_s18, 4  ;;  %p177_p2 = scmp.lt.s32.totalorder %s2922_s17, 5 }
   0x5   : > { %s3565_s18 = smov (%p28_p1, %s26_s18), 0  ;;  %p178_p3 = pnand %p2053_p0, %p177_p2 }
   0x6   : > { %p201_p4 = scmp.lt.s32.totalorder (!%p178_p3), %s2914_s15, 3  ;;  %p210_p5 = scmp.lt.s32.totalorder (!%p178_p3), %s2914_s15, 0 }
   0x7   : > { %181 = sbr.rel (%p178_p3) target bundleno = 1238 (0x4d6), region = 36  ;;  %s211_s23 = ssub.s32 (!%p178_p3), 0, %s2914_s15 }
   0x8   : > { %s2056_s7 = smin.u32 (!%p178_p3), %s2914_s15, %s211_s23  ;;  %s3007_s8 = sadd.s32 (!%p178_p3), 1, %s2914_s15 }
   0x9   : > { %s213_s29 = sand.u32 (!%p178_p3), 1, %s2056_s7   ;;  %s225_s10 = ssub.s32 (!%p178_p3), 0, %s3007_s8 }
   0xa   : > { %s214_s9 = ssub.s32 (!%p178_p3), 0, %s213_s29  ;;  %s2060_s25 = smin.u32 (!%p178_p3), %s225_s10, %s3007_s8 }
   0xb   : > { %p224_p7 = scmp.lt.s32.totalorder (!%p178_p3), %s3007_s8, 0  ;;  %s227_s14 = sand.u32 (!%p178_p3), 1, %s2060_s25  }
   0xc   : > { %v2973_v0 = vld [vmem:[%s3557_s0] sm:$0xf]  ;;  %v2990_v3 = vld [vmem:[%s3557_s0] sm:$0xf0]  ;;  %s202_s28 = scalar_select %p201_p4, %s2914_s15, 3 }
   0xd   : > { %v2978_v1 = vld [vmem:[%s3557_s0] sm:$0xf]  ;;  %v2998_v4 = vld [vmem:[%s3557_s0] sm:$0xf0]  ;;  %v3012_v6 = vld [vmem:[%s3557_s0 + $0x8] sm:$0xf]  ;;  %s3567_s9 = smov (!%p210_p5, %s214_s9), %s213_s29 }
   0xe   : > { %v2985_v2 = vld [vmem:[%s3557_s0] sm:$0xf]  ;;  %v3003_v5 = vld [vmem:[%s3557_s0] sm:$0xf0]  ;;  %v3017_v7 = vld [vmem:[%s3557_s0 + $0x8] sm:$0xf]  ;;  %s3022_s20 = scalar_lea.vmem %s3560_s3, %s202_s28 }
   0xf   : > { %s2554_s13 = sshll.u32 %s202_s28, 7  ;;  %v3027_v8 = vld [vmem:[%s3557_s0 + $0x8] sm:$0xf]  ;;  %v3032_v9 = vld [vmem:[%s3557_s0 + $0x8] sm:$0xf0]  ;;  %p2058_p6 = scmp.lt.s32.totalorder %s3567_s9, 0 }
  0x10   : > { %s3037_s27 = scalar_lea.vmem %s3559_s2, %s2554_s13  ;;  %v3042_v10 = vld [vmem:[%s3557_s0 + $0x8] sm:$0xf0]  ;;  %v3053_v12 = vld [vmem:[%s3557_s0 + $0x10] sm:$0xf]  ;;  %v3070_v15 = vld [vmem:[%s3557_s0 + $0x10] sm:$0xf0] }
  0x11   : > { %v3047_v11 = vld [vmem:[%s3557_s0 + $0x8] sm:$0xf0]  ;;  %v3058_v13 = vld [vmem:[%s3557_s0 + $0x10] sm:$0xf]  ;;  %v3075_v16 = vld [vmem:[%s3557_s0 + $0x10] sm:$0xf0] }
  0x12   : > { %v3065_v14 = vld [vmem:[%s3557_s0 + $0x10] sm:$0xf]  ;;  %v3081_v17 = vld [vmem:[%s3557_s0 + $0x10] sm:$0xf0]  ;;  %v3086_v18 = vld [vmem:[%s3557_s0 + $0x18] sm:$0xf] }
  0x13   : > { %v3091_v19 = vld [vmem:[%s3557_s0 + $0x18] sm:$0xf]  ;;  %s220_s11 = sadd.s32 2, %s3567_s9  ;;  %v3101_v21 = vld [vmem:[%s3557_s0 + $0x18] sm:$0xf0]  ;;  %s228_s28 = ssub.s32 0, %s227_s14 }
  0x14   : > { %v3096_v20 = vld [vmem:[%s3557_s0 + $0x18] sm:$0xf]  ;;  %v3107_v22 = vld [vmem:[%s3557_s0 + $0x18] sm:$0xf0]  ;;  %s3569_s11 = smov (!%p2058_p6, %s220_s11), %s3567_s9  ;;  %v3119_v24 = vld [vmem:[%s3557_s0 + $0x20] sm:$0xf]  ;;  %s3571_s28 = smov (!%p224_p7, %s228_s28), %s227_s14 }
  0x15   : > { %v3112_v23 = vld [vmem:[%s3557_s0 + $0x18] sm:$0xf0]  ;;  %v3124_v25 = vld [vmem:[%s3557_s0 + $0x20] sm:$0xf]  ;;  %v3134_v27 = vld [vmem:[%s3557_s0 + $0x20] sm:$0xf0] }
  0x16   : > { %v3129_v26 = vld [vmem:[%s3557_s0 + $0x20] sm:$0xf]  ;;  %v3139_v28 = vld [vmem:[%s3557_s0 + $0x20] sm:$0xf0]  ;;  %s2059_s10 = sshll.u32 %s3569_s11, 7  ;;  %p2062_p8 = scmp.lt.s32.totalorder %s3571_s28, 0 }
  0x17   : > { %v3145_v29 = vld [vmem:[%s3557_s0 + $0x20] sm:$0xf0]  ;;  %v3150_v30 = vld [vmem:[%s3557_s0 + $0x28] sm:$0xf]  ;;  %v3167_v33 = vld [vmem:[%s3557_s0 + $0x28] sm:$0xf0] }
  0x18   : > { %v3157_v31 = vld [vmem:[%s3557_s0 + $0x28] sm:$0xf]  ;;  %v3172_v34 = vld [vmem:[%s3557_s0 + $0x28] sm:$0xf0]  ;;  %v3182_v36 = vld [vmem:[%s3557_s0 + $0x30] sm:$0xf] }
  0x19   : > { %v3162_v32 = vld [vmem:[%s3557_s0 + $0x28] sm:$0xf]  ;;  %v3177_v35 = vld [vmem:[%s3557_s0 + $0x28] sm:$0xf0]  ;;  %s234_s13 = sadd.s32 2, %s3571_s28  ;;  %p2064_p9 = scmp.ne.s32.totalorder %s2914_s15, 0 }
  0x1a   : > { %v3187_v37 = vld [vmem:[%s3557_s0 + $0x30] sm:$0xf]  ;;  %v3195_v39 = vld [vmem:[%s3557_s0 + $0x30] sm:$0xf0]  ;;  %s3573_s13 = smov (!%p2062_p8, %s234_s13), %s3571_s28  ;;  %v3210_v42 = vld [vmem:[%s3557_s0 + $0x38] sm:$0xf] }
  0x1b   : > { %v2091_v38 = vld [vmem:[%s3557_s0 + $0x30] sm:$0xf]  ;;  %v3200_v40 = vld [vmem:[%s3557_s0 + $0x30] sm:$0xf0]  ;;  %v3215_v43 = vld [vmem:[%s3557_s0 + $0x38] sm:$0xf] }
  0x1c   : > { %v2575_v41 = vld [vmem:[%s3557_s0 + $0x30] sm:$0xf0]  ;;  %v2095_v44 = vld [vmem:[%s3557_s0 + $0x38] sm:$0xf]  ;;  %v3223_v45 = vld [vmem:[%s3557_s0 + $0x38] sm:$0xf0] }
  0x1d   : > { %v3228_v46 = vld [vmem:[%s3557_s0 + $0x38] sm:$0xf0]  ;;  %s2063_s24 = sshll.u32 %s3573_s13, 7  ;;  %260 = sbr.rel (%p2064_p9) target bundleno = 429 (0x1ad), region = 40 }
  0x1e   : > { %v2578_v47 = vld [vmem:[%s3557_s0 + $0x38] sm:$0xf0]  ;;  %s815_s26 = sshra.s32 (!%p2064_p9), %s2059_s10, 3 }
  0x1f   : > { %s2225_s30 = sshll.u32 (!%p2064_p9), %s815_s26, 2 }
  0x20   : > { %s3318_s25 = scalar_lea.vmem (!%p2064_p9), [#allocation2], %s2225_s30 }
  0x22   : > { %v2586_v48 = vld [vmem:[%s3558_s1 + $0x38] sm:$0xff]  ;;  %v2585_v49 = vld [vmem:[%s3558_s1 + $0x30] sm:$0xff]  ;;  %v2584_v50 = vld [vmem:[%s3558_s1 + $0x28] sm:$0xff]  ;;  %v2068_v56 = vor.u32 %v3003_v5, %v2985_v2  ;;  %v2092_v57 = vor.u32 %v2575_v41, %v2091_v38  ;;  %v2072_v58 = vor.u32 %v3047_v11, %v3027_v8  ;;  %v2096_v59 = vor.u32 %v2578_v47, %v2095_v44 }
  0x23   : > { %391 = vmatpush.bf16.msra.mxu0 %v2586_v48  ;;  %2769 = vmatpush.bf16.msra.mxu3 %v2586_v48  ;;  %v2583_v51 = vld [vmem:[%s3558_s1 + $0x20] sm:$0xff]  ;;  %v2582_v52 = vld [vmem:[%s3558_s1 + $0x18] sm:$0xff]  ;;  %v2581_v53 = vld [vmem:[%s3558_s1 + $0x10] sm:$0xff]  ;;  %v2076_v60 = vor.u32 %v3081_v17, %v3065_v14  ;;  %v2080_v61 = vor.u32 %v3112_v23, %v3096_v20  ;;  %v2084_v20 = vor.u32 %v3145_v29, %v3129_v26 }
  0x24   : > { %v2580_v54 = vld [vmem:[%s3558_s1 + $0x8] sm:$0xff]  ;;  %v2579_v55 = vld [vmem:[%s3558_s1] sm:$0xff]  ;;  %v2610_v62 = vld [vmem:[%s3037_s27 + $0x78] sm:$0xff]  ;;  %v2088_v44 = vor.u32 %v3177_v35, %v3162_v32 }
  0x25   : > { %v2602_v63 = vld [vmem:[%s3037_s27 + $0x38] sm:$0xff]  ;;  %733 = vmatpush.bf16.msra.mxu2 %v2610_v62  ;;  %v2609_v2 = vld [vmem:[%s3037_s27 + $0x70] sm:$0xff]  ;;  %v2608_v8 = vld [vmem:[%s3037_s27 + $0x68] sm:$0xff] }
  0x26   : > { %684 = vmatpush.bf16.msra.mxu1 %v2602_v63  ;;  %v2601_v5 = vld [vmem:[%s3037_s27 + $0x30] sm:$0xff]  ;;  %v2600_v11 = vld [vmem:[%s3037_s27 + $0x28] sm:$0xff]  ;;  %v2607_v14 = vld [vmem:[%s3037_s27 + $0x60] sm:$0xff] }
  0x27   : > { %392 = vmatpush.bf16.msra.mxu0 %v2585_v49  ;;  %2770 = vmatpush.bf16.msra.mxu3 %v2585_v49  ;;  %v2599_v17 = vld [vmem:[%s3037_s27 + $0x20] sm:$0xff]  ;;  %v2606_v23 = vld [vmem:[%s3037_s27 + $0x58] sm:$0xff]  ;;  %v2605_v38 = vld [vmem:[%s3037_s27 + $0x50] sm:$0xff] }
  0x28   : > { %v2604_v41 = vld [vmem:[%s3037_s27 + $0x48] sm:$0xff]  ;;  %v2598_v47 = vld [vmem:[%s3037_s27 + $0x18] sm:$0xff]  ;;  %v2603_v48 = vld [vmem:[%s3037_s27 + $0x40] sm:$0xff] }
  0x29   : > { %734 = vmatpush.bf16.msra.mxu2 %v2609_v2  ;;  %v2587_v26 = vld [vmem:[%s3558_s1] sm:$0xff]  ;;  %v2597_v29 = vld [vmem:[%s3037_s27 + $0x10] sm:$0xff]  ;;  %v2596_v49 = vld [vmem:[%s3037_s27 + $0x8] sm:$0xff] }
  0x2a   : > { %685 = vmatpush.bf16.msra.mxu1 %v2601_v5  ;;  %v2588_v32 = vld [vmem:[%s3558_s1 + $0x8] sm:$0xff] }
  0x2b   : > { %393 = vmatpush.bf16.msra.mxu0 %v2584_v50  ;;  %2771 = vmatpush.bf16.msra.mxu3 %v2584_v50  ;;  %v2595_v50 = vld [vmem:[%s3037_s27] sm:$0xff] }
  0x2d   : > { %735 = vmatpush.bf16.msra.mxu2 %v2608_v8 }
  0x2e   : > { %686 = vmatpush.bf16.msra.mxu1 %v2600_v11 }
  0x2f   : > { %394 = vmatpush.bf16.msra.mxu0 %v2583_v51  ;;  %2772 = vmatpush.bf16.msra.mxu3 %v2583_v51  ;;  %v2589_v51 = vld [vmem:[%s3558_s1 + $0x10] sm:$0xff] }
  0x31   : > { %736 = vmatpush.bf16.msra.mxu2 %v2607_v14 }
  0x32   : > { %687 = vmatpush.bf16.msra.mxu1 %v2599_v17 }
  0x33   : > { %395 = vmatpush.bf16.msra.mxu0 %v2582_v52  ;;  %2773 = vmatpush.bf16.msra.mxu3 %v2582_v52 }
  0x35   : > { %737 = vmatpush.bf16.msra.mxu2 %v2606_v23 }
  0x36   : > { %688 = vmatpush.bf16.msra.mxu1 %v2598_v47 }
  0x37   : > { %396 = vmatpush.bf16.msra.mxu0 %v2581_v53  ;;  %2774 = vmatpush.bf16.msra.mxu3 %v2581_v53 }
  0x39   : > { %738 = vmatpush.bf16.msra.mxu2 %v2605_v38 }
  0x3a   : > { %689 = vmatpush.bf16.msra.mxu1 %v2597_v29 }
  0x3b   : > { %397 = vmatpush.bf16.msra.mxu0 %v2580_v54  ;;  %2775 = vmatpush.bf16.msra.mxu3 %v2580_v54 }
  0x3d   : > { %739 = vmatpush.bf16.msra.mxu2 %v2604_v41 }
  0x3e   : > { %690 = vmatpush.bf16.msra.mxu1 %v2596_v49 }
  0x3f   : > { %398 = vmatpush.bf16.msra.mxu0 %v2579_v55  ;;  %2776 = vmatpush.bf16.msra.mxu3 %v2579_v55 }
  0x41   : > { %740 = vmatpush.bf16.msra.mxu2 %v2603_v48 }
  0x42   : > { %399 = vmatmul.bf16.vlgmr.msra.gmra.mxu0 %v2068_v56  ;;  %429 = vmatmul.bf16.vlgmr.msra.gmra.mxu3 %v2092_v57 }
  0x43   : > { %2777 = vmatpush.bf16.msrb.mxu3 %v2602_v63  ;;  %691 = vmatpush.bf16.msra.mxu1 %v2595_v50 }
  0x44   : > { %741 = vmatmul.bf16.vlgmr.msra.gmra.mxu2 %v2587_v26 }
  0x47   : > { %2778 = vmatpush.bf16.msrb.mxu3 %v2601_v5  ;;  %v2590_v5 = vld [vmem:[%s3558_s1 + $0x18] sm:$0xff] }
  0x4b   : > { %2779 = vmatpush.bf16.msrb.mxu3 %v2600_v11 }
  0x4f   : > { %2780 = vmatpush.bf16.msrb.mxu3 %v2599_v17 }
  0x52   : > { %404 = vmatmul.bf16.gmra.mxu0 %v2072_v58  ;;  %434 = vmatmul.bf16.gmra.mxu3 %v2096_v59 }
  0x53   : > { %2781 = vmatpush.bf16.msrb.mxu3 %v2598_v47 }
  0x54   : > { %746 = vmatmul.bf16.gmra.mxu2 %v2588_v32 }
  0x57   : > { %2782 = vmatpush.bf16.msrb.mxu3 %v2597_v29 }
  0x5b   : > { %2783 = vmatpush.bf16.msrb.mxu3 %v2596_v49 }
  0x5f   : > { %2784 = vmatpush.bf16.msrb.mxu3 %v2595_v50  ;;  %v2591_v50 = vld [vmem:[%s3558_s1 + $0x20] sm:$0xff] }
  0x62   : > { %409 = vmatmul.bf16.gmra.mxu0 %v2076_v60 }
  0x63   : > { %2785 = vmatpush.bf16.msra.mxu3 %v2610_v62 }
  0x64   : > { %751 = vmatmul.bf16.gmra.mxu2 %v2589_v51 }
  0x67   : > { %2786 = vmatpush.bf16.msra.mxu3 %v2609_v2 }
  0x6b   : > { %2787 = vmatpush.bf16.msra.mxu3 %v2608_v8 }
  0x6f   : > { %2788 = vmatpush.bf16.msra.mxu3 %v2607_v14 }
  0x72   : > { %414 = vmatmul.bf16.gmra.mxu0 %v2080_v61 }
  0x73   : > { %2789 = vmatpush.bf16.msra.mxu3 %v2606_v23 }
  0x74   : > { %756 = vmatmul.bf16.gmra.mxu2 %v2590_v5 }
  0x77   : > { %2790 = vmatpush.bf16.msra.mxu3 %v2605_v38 }
  0x7b   : > { %2791 = vmatpush.bf16.msra.mxu3 %v2604_v41 }
  0x7f   : > { %2792 = vmatpush.bf16.msra.mxu3 %v2603_v48 }
  0x82   : > { %419 = vmatmul.bf16.gmra.mxu0 %v2084_v20 }
  0x84   : > { %761 = vmatmul.bf16.gmra.mxu2 %v2591_v50 }
  0x92   : > { %424 = vmatmul.bf16.gmra.mxu0 %v2088_v44 }
  0xbf   : > { %v400_v35 = vpop.f32.mrf.mxu0 }
  0xc0   : > { %v440_v53 = vpack.c.bf16 %v400_v35, %v400_v35 }
  0xc2   : > { %v472_v56 = vunpack.c.l.b16 %v440_v53 }
  0xc5   : > { %v430_v52 = vpop.f32.mrf.mxu3 }
  0xc6   : > { %v452_v57 = vpack.c.bf16 %v430_v52, %v430_v52 }
  0xc7   : > { %v402_v54 = vpop.f32.mrf.mxu0  ;;  %v742_v50 = vpop.f32.mrf.mxu2 }
  0xc8   : > { %v441_v55 = vpack.c.bf16 %v402_v54, %v402_v54  ;;  %v484_v61 = vunpack.c.l.b16 %v452_v57  ;;  %v2593_v57 = vld [vmem:[%s3558_s1 + $0x30] sm:$0xff] }
  0xca   : > { %v473_v58 = vunpack.c.l.b16 %v441_v55 }
  0xcc   : > { %v488_v59 = vpack.c.b16 %v473_v58, %v472_v56  ;;  %v2592_v58 = vld [vmem:[%s3558_s1 + $0x28] sm:$0xff] }
  0xcd   : > { %v432_v60 = vpop.f32.mrf.mxu3  ;;  %766 = vmatmul.bf16.gmra.mxu2 %v2592_v58 }
  0xce   : > { %v453_v62 = vpack.c.bf16 %v432_v60, %v432_v60  ;;  %692 = vmatmul.bf16.vlgmr.msra.gmra.mxu1 %v488_v59 }
  0xcf   : > { %v405_v63 = vpop.f32.mrf.mxu0 }
  0xd0   : > { %v485_v2 = vunpack.c.l.b16 %v453_v62  ;;  %v442_v14 = vpack.c.bf16 %v405_v63, %v405_v63 }
  0xd2   : > { %v494_v8 = vpack.c.b16 %v485_v2, %v484_v61  ;;  %v474_v23 = vunpack.c.l.b16 %v442_v14 }
  0xd4   : > { %722 = vmatmul.bf16.vlgmr.msrb.gmra.mxu3 %v494_v8  ;;  %v2594_v8 = vld [vmem:[%s3558_s1 + $0x38] sm:$0xff] }
  0xd5   : > { %v435_v11 = vpop.f32.mrf.mxu3 }
  0xd6   : > { %v454_v38 = vpack.c.bf16 %v435_v11, %v435_v11 }
  0xd7   : > { %v407_v17 = vpop.f32.mrf.mxu0 }
  0xd8   : > { %v443_v20 = vpack.c.bf16 %v407_v17, %v407_v17  ;;  %v486_v48 = vunpack.c.l.b16 %v454_v38 }
  0xda   : > { %v475_v41 = vunpack.c.l.b16 %v443_v20 }
  0xdc   : > { %v489_v44 = vpack.c.b16 %v475_v41, %v474_v23 }
  0xdd   : > { %v437_v47 = vpop.f32.mrf.mxu3 }
  0xde   : > { %v455_v26 = vpack.c.bf16 %v437_v47, %v437_v47  ;;  %697 = vmatmul.bf16.gmra.mxu1 %v489_v44 }
  0xdf   : > { %v410_v29 = vpop.f32.mrf.mxu0 }
  0xe0   : > { %v487_v49 = vunpack.c.l.b16 %v455_v26  ;;  %v444_v35 = vpack.c.bf16 %v410_v29, %v410_v29 }
  0xe2   : > { %v495_v32 = vpack.c.b16 %v487_v49, %v486_v48  ;;  %v476_v53 = vunpack.c.l.b16 %v444_v35 }
  0xe4   : > { %727 = vmatmul.bf16.gmra.mxu3 %v495_v32  ;;  %v744_v32 = vpop.f32.mrf.mxu2 }
  0xe7   : > { %v412_v51 = vpop.f32.mrf.mxu0 }
  0xe8   : > { %v445_v52 = vpack.c.bf16 %v412_v51, %v412_v51 }
  0xea   : > { %v477_v54 = vunpack.c.l.b16 %v445_v52  ;;  %v3312_v52 = vld [vmem:[%s3022_s20] ss:$0 sm:$0xff] }
  0xec   : > { %v490_v55 = vpack.c.b16 %v477_v54, %v476_v53  ;;  %v747_v51 = vpop.f32.mrf.mxu2 }
  0xee   : > { %702 = vmatmul.bf16.gmra.mxu1 %v490_v55 }
  0xef   : > { %v415_v56 = vpop.f32.mrf.mxu0 }
  0xf0   : > { %v446_v59 = vpack.c.bf16 %v415_v56, %v415_v56 }
  0xf2   : > { %v478_v62 = vunpack.c.l.b16 %v446_v59 }
  0xf4   : > { %771 = vmatmul.bf16.vlgmr.msra.gmra.mxu3 %v2593_v57  ;;  %v749_v57 = vpop.f32.mrf.mxu2 }
  0xf7   : > { %v417_v60 = vpop.f32.mrf.mxu0 }
  0xf8   : > { %v447_v61 = vpack.c.bf16 %v417_v60, %v417_v60 }
  0xfa   : > { %v479_v63 = vunpack.c.l.b16 %v447_v61 }
  0xfc   : > { %v491_v2 = vpack.c.b16 %v479_v63, %v478_v62 }
  0xfe   : > { %707 = vmatmul.bf16.gmra.mxu1 %v491_v2 }
  0xff   : > { %v420_v5 = vpop.f32.mrf.mxu0 }
 0x100   : > { %v448_v11 = vpack.c.bf16 %v420_v5, %v420_v5  ;;  %v752_v5 = vpop.f32.mrf.mxu2 }
 0x102   : > { %v480_v20 = vunpack.c.l.b16 %v448_v11 }
 0x104   : > { %776 = vmatmul.bf16.gmra.mxu3 %v2594_v8 }
 0x107   : > { %v422_v14 = vpop.f32.mrf.mxu0 }
 0x108   : > { %v449_v17 = vpack.c.bf16 %v422_v14, %v422_v14 }
 0x10a   : > { %v481_v23 = vunpack.c.l.b16 %v449_v17 }
 0x10c   : > { %v492_v38 = vpack.c.b16 %v481_v23, %v480_v20 }
 0x10e   : > { %712 = vmatmul.bf16.gmra.mxu1 %v492_v38 }
 0x10f   : > { %v425_v41 = vpop.f32.mrf.mxu0 }
 0x110   : > { %v450_v44 = vpack.c.bf16 %v425_v41, %v425_v41 }
 0x112   : > { %v482_v26 = vunpack.c.l.b16 %v450_v44  ;;  %v754_v44 = vpop.f32.mrf.mxu2 }
 0x117   : > { %v427_v47 = vpop.f32.mrf.mxu0 }
 0x118   : > { %v451_v48 = vpack.c.bf16 %v427_v47, %v427_v47 }
 0x11a   : > { %v483_v29 = vunpack.c.l.b16 %v451_v48 }
 0x11c   : > { %v493_v49 = vpack.c.b16 %v483_v29, %v482_v26 }
 0x11e   : > { %717 = vmatmul.bf16.gmra.mxu1 %v493_v49 }
 0x14b   : > { %v693_v35 = vpop.f32.mrf.mxu1 }
 0x14c   : > { %v694_v53 = vadd.f32 %v3312_v52, %v693_v35 }
 0x14e   : > { %v743_v55 = vadd.f32 %v742_v50, %v694_v53  ;;  %v757_v50 = vpop.f32.mrf.mxu2 }
 0x150   : > { %v782_v60 = vmax.f32 %v743_v55, 0.0 }
 0x153   : > { %v695_v54 = vpop.f32.mrf.mxu1 }
 0x154   : > { %v696_v56 = vadd.f32 %v3312_v52, %v695_v54 }
 0x156   : > { %v745_v58 = vadd.f32 %v744_v32, %v696_v56 }
 0x157   : > { %v723_v59 = vpop.f32.mrf.mxu3 }
 0x158   : > { %v783_v61 = vmax.f32 %v745_v58, 0.0  ;;  %v724_v58 = vadd.f32 %v3312_v52, %v723_v59 }
 0x15a   : > { %v2678_v62 = vpack.c.bf16 %v783_v61, %v782_v60  ;;  %v759_v60 = vpop.f32.mrf.mxu2 }
 0x15b   : > { %v698_v63 = vpop.f32.mrf.mxu1 }
 0x15c   : > { %2679 = vst [vmem:[%s3318_s25] sm:$0xff] %v2678_v62   ;;  %v699_v8 = vadd.f32 %v3312_v52, %v698_v63 }
 0x15e   : > { %v748_v14 = vadd.f32 %v747_v51, %v699_v8 }
 0x15f   : > { %v725_v2 = vpop.f32.mrf.mxu3 }
 0x160   : > { %v784_v38 = vmax.f32 %v748_v14, 0.0  ;;  %v726_v61 = vadd.f32 %v3312_v52, %v725_v2 }
 0x162   : > { %v762_v59 = vpop.f32.mrf.mxu2 }
 0x163   : > { %v700_v11 = vpop.f32.mrf.mxu1 }
 0x164   : > { %v701_v17 = vadd.f32 %v3312_v52, %v700_v11 }
 0x166   : > { %v750_v20 = vadd.f32 %v749_v57, %v701_v17 }
 0x167   : > { %v728_v23 = vpop.f32.mrf.mxu3 }
 0x168   : > { %v785_v41 = vmax.f32 %v750_v20, 0.0 }
 0x16a   : > { %v2683_v47 = vpack.c.bf16 %v785_v41, %v784_v38 }
 0x16b   : > { %v703_v48 = vpop.f32.mrf.mxu1 }
 0x16c   : > { %2755 = vst [vmem:[%s3318_s25 + $0x8] sm:$0xff] %v2683_v47   ;;  %v704_v29 = vadd.f32 %v3312_v52, %v703_v48 }
 0x16e   : > { %v753_v32 = vadd.f32 %v752_v5, %v704_v29 }
 0x16f   : > { %v730_v26 = vpop.f32.mrf.mxu3 }
 0x170   : > { %v786_v54 = vmax.f32 %v753_v32, 0.0  ;;  %v729_v32 = vadd.f32 %v3312_v52, %v728_v23 }
 0x173   : > { %v705_v49 = vpop.f32.mrf.mxu1 }
 0x174   : > { %v706_v35 = vadd.f32 %v3312_v52, %v705_v49 }
 0x176   : > { %v755_v51 = vadd.f32 %v754_v44, %v706_v35  ;;  %v731_v35 = vadd.f32 %v3312_v52, %v730_v26 }
 0x177   : > { %v772_v53 = vpop.f32.mrf.mxu3 }
 0x178   : > { %v787_v55 = vmax.f32 %v755_v51, 0.0  ;;  %v773_v62 = vadd.f32 %v772_v53, %v724_v58 }
 0x17a   : > { %v2688_v56 = vpack.c.bf16 %v787_v55, %v786_v54  ;;  %v794_v11 = vmax.f32 %v773_v62, 0.0  ;;  %v764_v55 = vpop.f32.mrf.mxu2 }
 0x17b   : > { %v708_v57 = vpop.f32.mrf.mxu1 }
 0x17c   : > { %2756 = vst [vmem:[%s3318_s25 + $0x10] sm:$0xff] %v2688_v56   ;;  %v709_v8 = vadd.f32 %v3312_v52, %v708_v57 }
 0x17e   : > { %v758_v20 = vadd.f32 %v757_v50, %v709_v8 }
 0x17f   : > { %v774_v63 = vpop.f32.mrf.mxu3 }
 0x180   : > { %v775_v5 = vadd.f32 %v774_v63, %v726_v61  ;;  %v788_v48 = vmax.f32 %v758_v20, 0.0 }
 0x182   : > { %v795_v14 = vmax.f32 %v775_v5, 0.0  ;;  %v767_v5 = vpop.f32.mrf.mxu2 }
 0x183   : > { %v710_v17 = vpop.f32.mrf.mxu1 }
 0x184   : > { %v2708_v38 = vpack.c.bf16 %v795_v14, %v794_v11  ;;  %v711_v41 = vadd.f32 %v3312_v52, %v710_v17 }
 0x186   : > { %2760 = vst [vmem:[%s3318_s25 + $0x30] sm:$0xff] %v2708_v38   ;;  %v760_v44 = vadd.f32 %v759_v60, %v711_v41 }
 0x187   : > { %v777_v47 = vpop.f32.mrf.mxu3 }
 0x188   : > { %v789_v29 = vmax.f32 %v760_v44, 0.0  ;;  %v778_v51 = vadd.f32 %v777_v47, %v729_v32 }
 0x18a   : > { %v2693_v2 = vpack.c.bf16 %v789_v29, %v788_v48  ;;  %v796_v56 = vmax.f32 %v778_v51, 0.0  ;;  %v769_v41 = vpop.f32.mrf.mxu2 }
 0x18b   : > { %v713_v49 = vpop.f32.mrf.mxu1 }
 0x18c   : > { %2757 = vst [vmem:[%s3318_s25 + $0x18] sm:$0xff] %v2693_v2   ;;  %v714_v50 = vadd.f32 %v3312_v52, %v713_v49 }
 0x18e   : > { %v763_v60 = vadd.f32 %v762_v59, %v714_v50 }
 0x18f   : > { %v779_v53 = vpop.f32.mrf.mxu3 }
 0x190   : > { %v780_v54 = vadd.f32 %v779_v53, %v731_v35  ;;  %v790_v23 = vmax.f32 %v763_v60, 0.0 }
 0x192   : > { %v797_v57 = vmax.f32 %v780_v54, 0.0 }
 0x193   : > { %v715_v58 = vpop.f32.mrf.mxu1 }
 0x194   : > { %v2713_v61 = vpack.c.bf16 %v797_v57, %v796_v56  ;;  %v716_v62 = vadd.f32 %v3312_v52, %v715_v58 }
 0x196   : > { %2761 = vst [vmem:[%s3318_s25 + $0x38] sm:$0xff] %v2713_v61   ;;  %v765_v63 = vadd.f32 %v764_v55, %v716_v62 }
 0x198   : > { %v791_v8 = vmax.f32 %v765_v63, 0.0 }
 0x19a   : > { %v2698_v26 = vpack.c.bf16 %v791_v8, %v790_v23 }
 0x19b   : > { %v718_v11 = vpop.f32.mrf.mxu1 }
 0x19c   : > { %2758 = vst [vmem:[%s3318_s25 + $0x20] sm:$0xff] %v2698_v26   ;;  %v719_v14 = vadd.f32 %v3312_v52, %v718_v11 }
 0x19e   : > { %v768_v20 = vadd.f32 %v767_v5, %v719_v14 }
 0x1a0   : > { %v792_v59 = vmax.f32 %v768_v20, 0.0 }
 0x1a3   : > { %v720_v17 = vpop.f32.mrf.mxu1 }
 0x1a4   : > { %v721_v38 = vadd.f32 %v3312_v52, %v720_v17 }
 0x1a6   : > { %v770_v44 = vadd.f32 %v769_v41, %v721_v38 }
 0x1a8   : > { %v793_v47 = vmax.f32 %v770_v44, 0.0 }
 0x1aa   : > { %v2703_v48 = vpack.c.bf16 %v793_v47, %v792_v59 }
 0x1ac   : > { %2759 = vst [vmem:[%s3318_s25 + $0x28] sm:$0xff] %v2703_v48  }
 0x1ad PF: > { %p835_p10 = scmp.gt.s32.totalorder %s2914_s15, 0 }
 0x1af   : > { %p837_p11 = pnand %p835_p10, %p201_p4 }
 0x1b0   : > { %s841_s29 = sshra.s32 (!%p837_p11), %s2063_s24, 3  ;;  %s1402_s8 = sshra.s32 (!%p837_p11), %s2059_s10, 3 }
 0x1b1   : > { %840 = sbr.rel (%p837_p11) target bundleno = 833 (0x341), region = 44  ;;  %s2226_s5 = sshll.u32 (!%p837_p11), %s841_s29, 2 }
 0x1b2   : > { %s3347_s6 = scalar_lea.vmem (!%p837_p11), [#allocation2], %s2226_s5  ;;  %s2388_s14 = sshll.u32 (!%p837_p11), %s1402_s8, 2 }
 0x1b3   : > { %s3404_s9 = scalar_lea.vmem (!%p837_p11), [#allocation2], %s2388_s14 }
 0x1b6   : > { %v2618_v52 = vld [vmem:[%s3347_s6 + $0x38] sm:$0xff]  ;;  %v2617_v29 = vld [vmem:[%s3347_s6 + $0x30] sm:$0xff]  ;;  %v2616_v2 = vld [vmem:[%s3347_s6 + $0x28] sm:$0xff]  ;;  %v2231_v50 = vor.u32 %v2998_v4, %v2978_v1  ;;  %v2255_v54 = vor.u32 %v3200_v40, %v3187_v37  ;;  %v2235_v55 = vor.u32 %v3042_v10, %v3017_v7  ;;  %v2259_v56 = vor.u32 %v3228_v46, %v3215_v43 }
 0x1b7   : > { %978 = vmatpush.bf16.msra.mxu0 %v2618_v52  ;;  %2793 = vmatpush.bf16.msra.mxu3 %v2618_v52  ;;  %v2615_v49 = vld [vmem:[%s3347_s6 + $0x20] sm:$0xff]  ;;  %v2614_v32 = vld [vmem:[%s3347_s6 + $0x18] sm:$0xff]  ;;  %v2613_v35 = vld [vmem:[%s3347_s6 + $0x10] sm:$0xff]  ;;  %v2239_v1 = vor.u32 %v3075_v16, %v3058_v13  ;;  %v2243_v4 = vor.u32 %v3107_v22, %v3091_v19  ;;  %v2247_v22 = vor.u32 %v3139_v28, %v3124_v25 }
 0x1b8   : > { %v2612_v51 = vld [vmem:[%s3347_s6 + $0x8] sm:$0xff]  ;;  %v2611_v53 = vld [vmem:[%s3347_s6] sm:$0xff]  ;;  %v2642_v37 = vld [vmem:[%s3037_s27 + $0x78] sm:$0xff]  ;;  %v2251_v60 = vor.u32 %v3172_v34, %v3157_v31 }
 0x1b9   : > { %v2634_v40 = vld [vmem:[%s3037_s27 + $0x38] sm:$0xff]  ;;  %1320 = vmatpush.bf16.msra.mxu2 %v2642_v37  ;;  %v2641_v7 = vld [vmem:[%s3037_s27 + $0x70] sm:$0xff]  ;;  %v2640_v43 = vld [vmem:[%s3037_s27 + $0x68] sm:$0xff] }
 0x1ba   : > { %1271 = vmatpush.bf16.msra.mxu1 %v2634_v40  ;;  %v2633_v10 = vld [vmem:[%s3037_s27 + $0x30] sm:$0xff]  ;;  %v2632_v13 = vld [vmem:[%s3037_s27 + $0x28] sm:$0xff]  ;;  %v2639_v16 = vld [vmem:[%s3037_s27 + $0x60] sm:$0xff] }
 0x1bb   : > { %979 = vmatpush.bf16.msra.mxu0 %v2617_v29  ;;  %2794 = vmatpush.bf16.msra.mxu3 %v2617_v29  ;;  %v2631_v19 = vld [vmem:[%s3037_s27 + $0x20] sm:$0xff]  ;;  %v2638_v46 = vld [vmem:[%s3037_s27 + $0x58] sm:$0xff]  ;;  %v2637_v57 = vld [vmem:[%s3037_s27 + $0x50] sm:$0xff] }
 0x1bc   : > { %v2636_v58 = vld [vmem:[%s3037_s27 + $0x48] sm:$0xff]  ;;  %v2630_v61 = vld [vmem:[%s3037_s27 + $0x18] sm:$0xff]  ;;  %v2635_v25 = vld [vmem:[%s3037_s27 + $0x40] sm:$0xff] }
 0x1bd   : > { %1321 = vmatpush.bf16.msra.mxu2 %v2641_v7  ;;  %v2619_v28 = vld [vmem:[%s3347_s6] sm:$0xff]  ;;  %v2629_v62 = vld [vmem:[%s3037_s27 + $0x10] sm:$0xff]  ;;  %v2628_v63 = vld [vmem:[%s3037_s27 + $0x8] sm:$0xff] }
 0x1be   : > { %1272 = vmatpush.bf16.msra.mxu1 %v2633_v10  ;;  %v2627_v23 = vld [vmem:[%s3037_s27] sm:$0xff]  ;;  %v2620_v31 = vld [vmem:[%s3347_s6 + $0x8] sm:$0xff]  ;;  %v2621_v8 = vld [vmem:[%s3347_s6 + $0x10] sm:$0xff] }
 0x1bf   : > { %980 = vmatpush.bf16.msra.mxu0 %v2616_v2  ;;  %2795 = vmatpush.bf16.msra.mxu3 %v2616_v2  ;;  %v2622_v29 = vld [vmem:[%s3347_s6 + $0x18] sm:$0xff] }
 0x1c1   : > { %1322 = vmatpush.bf16.msra.mxu2 %v2640_v43 }
 0x1c2   : > { %1273 = vmatpush.bf16.msra.mxu1 %v2632_v13 }
 0x1c3   : > { %981 = vmatpush.bf16.msra.mxu0 %v2615_v49  ;;  %2796 = vmatpush.bf16.msra.mxu3 %v2615_v49 }
 0x1c5   : > { %1323 = vmatpush.bf16.msra.mxu2 %v2639_v16 }
 0x1c6   : > { %1274 = vmatpush.bf16.msra.mxu1 %v2631_v19 }
 0x1c7   : > { %982 = vmatpush.bf16.msra.mxu0 %v2614_v32  ;;  %2797 = vmatpush.bf16.msra.mxu3 %v2614_v32 }
 0x1c9   : > { %1324 = vmatpush.bf16.msra.mxu2 %v2638_v46 }
 0x1ca   : > { %1275 = vmatpush.bf16.msra.mxu1 %v2630_v61 }
 0x1cb   : > { %983 = vmatpush.bf16.msra.mxu0 %v2613_v35  ;;  %2798 = vmatpush.bf16.msra.mxu3 %v2613_v35 }
 0x1cd   : > { %1325 = vmatpush.bf16.msra.mxu2 %v2637_v57 }
 0x1ce   : > { %1276 = vmatpush.bf16.msra.mxu1 %v2629_v62 }
 0x1cf   : > { %984 = vmatpush.bf16.msra.mxu0 %v2612_v51  ;;  %2799 = vmatpush.bf16.msra.mxu3 %v2612_v51 }
 0x1d1   : > { %1326 = vmatpush.bf16.msra.mxu2 %v2636_v58 }
 0x1d2   : > { %1277 = vmatpush.bf16.msra.mxu1 %v2628_v63 }
 0x1d3   : > { %985 = vmatpush.bf16.msra.mxu0 %v2611_v53  ;;  %2800 = vmatpush.bf16.msra.mxu3 %v2611_v53 }
 0x1d5   : > { %1327 = vmatpush.bf16.msra.mxu2 %v2635_v25 }
 0x1d6   : > { %986 = vmatmul.bf16.vlgmr.msra.gmra.mxu0 %v2231_v50  ;;  %1016 = vmatmul.bf16.vlgmr.msra.gmra.mxu3 %v2255_v54 }
 0x1d7   : > { %2801 = vmatpush.bf16.msrb.mxu3 %v2634_v40  ;;  %1278 = vmatpush.bf16.msra.mxu1 %v2627_v23 }
 0x1d8   : > { %1328 = vmatmul.bf16.vlgmr.msra.gmra.mxu2 %v2619_v28 }
 0x1db   : > { %2802 = vmatpush.bf16.msrb.mxu3 %v2633_v10 }
 0x1df   : > { %2803 = vmatpush.bf16.msrb.mxu3 %v2632_v13 }
 0x1e3   : > { %2804 = vmatpush.bf16.msrb.mxu3 %v2631_v19 }
 0x1e6   : > { %991 = vmatmul.bf16.gmra.mxu0 %v2235_v55  ;;  %1021 = vmatmul.bf16.gmra.mxu3 %v2259_v56 }
 0x1e7   : > { %2805 = vmatpush.bf16.msrb.mxu3 %v2630_v61 }
 0x1e8   : > { %1333 = vmatmul.bf16.gmra.mxu2 %v2620_v31 }
 0x1eb   : > { %2806 = vmatpush.bf16.msrb.mxu3 %v2629_v62 }
 0x1ef   : > { %2807 = vmatpush.bf16.msrb.mxu3 %v2628_v63 }
 0x1f3   : > { %2808 = vmatpush.bf16.msrb.mxu3 %v2627_v23 }
 0x1f6   : > { %996 = vmatmul.bf16.gmra.mxu0 %v2239_v1 }
 0x1f7   : > { %2809 = vmatpush.bf16.msra.mxu3 %v2642_v37 }
 0x1f8   : > { %1338 = vmatmul.bf16.gmra.mxu2 %v2621_v8 }
 0x1fb   : > { %2810 = vmatpush.bf16.msra.mxu3 %v2641_v7  ;;  %v2623_v7 = vld [vmem:[%s3347_s6 + $0x20] sm:$0xff] }
 0x1ff   : > { %2811 = vmatpush.bf16.msra.mxu3 %v2640_v43 }
 0x203   : > { %2812 = vmatpush.bf16.msra.mxu3 %v2639_v16 }
 0x206   : > { %1001 = vmatmul.bf16.gmra.mxu0 %v2243_v4 }
 0x207   : > { %2813 = vmatpush.bf16.msra.mxu3 %v2638_v46 }
 0x208   : > { %1343 = vmatmul.bf16.gmra.mxu2 %v2622_v29 }
 0x20b   : > { %2814 = vmatpush.bf16.msra.mxu3 %v2637_v57 }
 0x20f   : > { %2815 = vmatpush.bf16.msra.mxu3 %v2636_v58  ;;  %v2625_v58 = vld [vmem:[%s3347_s6 + $0x30] sm:$0xff] }
 0x213   : > { %2816 = vmatpush.bf16.msra.mxu3 %v2635_v25 }
 0x216   : > { %1006 = vmatmul.bf16.gmra.mxu0 %v2247_v22 }
 0x218   : > { %1348 = vmatmul.bf16.gmra.mxu2 %v2623_v7 }
 0x226   : > { %1011 = vmatmul.bf16.gmra.mxu0 %v2251_v60  ;;  %v2624_v60 = vld [vmem:[%s3347_s6 + $0x28] sm:$0xff] }
 0x228   : > { %1353 = vmatmul.bf16.gmra.mxu2 %v2624_v60 }
 0x253   : > { %v987_v34 = vpop.f32.mrf.mxu0 }
 0x254   : > { %v1027_v5 = vpack.c.bf16 %v987_v34, %v987_v34  ;;  %v2626_v34 = vld [vmem:[%s3347_s6 + $0x38] sm:$0xff] }
 0x256   : > { %v1059_v17 = vunpack.c.l.b16 %v1027_v5 }
 0x259   : > { %v1017_v26 = vpop.f32.mrf.mxu3 }
 0x25a   : > { %v1039_v20 = vpack.c.bf16 %v1017_v26, %v1017_v26 }
 0x25b   : > { %v989_v11 = vpop.f32.mrf.mxu0 }
 0x25c   : > { %v1028_v14 = vpack.c.bf16 %v989_v11, %v989_v11  ;;  %v1071_v59 = vunpack.c.l.b16 %v1039_v20 }
 0x25e   : > { %v1060_v38 = vunpack.c.l.b16 %v1028_v14 }
 0x260   : > { %v1075_v41 = vpack.c.b16 %v1060_v38, %v1059_v17 }
 0x261   : > { %v1019_v44 = vpop.f32.mrf.mxu3 }
 0x262   : > { %v1040_v47 = vpack.c.bf16 %v1019_v44, %v1019_v44  ;;  %1279 = vmatmul.bf16.vlgmr.msra.gmra.mxu1 %v1075_v41 }
 0x263   : > { %v992_v48 = vpop.f32.mrf.mxu0 }
 0x264   : > { %v1072_v52 = vunpack.c.l.b16 %v1040_v47  ;;  %v1029_v32 = vpack.c.bf16 %v992_v48, %v992_v48 }
 0x266   : > { %v1081_v2 = vpack.c.b16 %v1072_v52, %v1071_v59  ;;  %v1061_v53 = vunpack.c.l.b16 %v1029_v32  ;;  %v1329_v52 = vpop.f32.mrf.mxu2  ;;  %v3398_v32 = vld [vmem:[%s3022_s20] ss:$0 sm:$0xff] }
 0x268   : > { %1309 = vmatmul.bf16.vlgmr.msrb.gmra.mxu3 %v1081_v2 }
 0x269   : > { %v1022_v49 = vpop.f32.mrf.mxu3 }
 0x26a   : > { %v1041_v50 = vpack.c.bf16 %v1022_v49, %v1022_v49 }
 0x26b   : > { %v994_v35 = vpop.f32.mrf.mxu0 }
 0x26c   : > { %v1030_v51 = vpack.c.bf16 %v994_v35, %v994_v35  ;;  %v1073_v1 = vunpack.c.l.b16 %v1041_v50 }
 0x26e   : > { %v1062_v54 = vunpack.c.l.b16 %v1030_v51  ;;  %v1331_v29 = vpop.f32.mrf.mxu2 }
 0x270   : > { %v1076_v55 = vpack.c.b16 %v1062_v54, %v1061_v53 }
 0x271   : > { %v1024_v56 = vpop.f32.mrf.mxu3 }
 0x272   : > { %v1042_v4 = vpack.c.bf16 %v1024_v56, %v1024_v56  ;;  %1284 = vmatmul.bf16.gmra.mxu1 %v1076_v55 }
 0x273   : > { %v997_v37 = vpop.f32.mrf.mxu0 }
 0x274   : > { %v1074_v40 = vunpack.c.l.b16 %v1042_v4  ;;  %v1031_v43 = vpack.c.bf16 %v997_v37, %v997_v37 }
 0x276   : > { %v1082_v10 = vpack.c.b16 %v1074_v40, %v1073_v1  ;;  %v1063_v19 = vunpack.c.l.b16 %v1031_v43  ;;  %v1334_v49 = vpop.f32.mrf.mxu2 }
 0x278   : > { %1314 = vmatmul.bf16.gmra.mxu3 %v1082_v10 }
 0x27b   : > { %v999_v13 = vpop.f32.mrf.mxu0 }
 0x27c   : > { %v1032_v16 = vpack.c.bf16 %v999_v13, %v999_v13 }
 0x27e   : > { %v1064_v22 = vunpack.c.l.b16 %v1032_v16  ;;  %v1336_v54 = vpop.f32.mrf.mxu2 }
 0x280   : > { %v1077_v46 = vpack.c.b16 %v1064_v22, %v1063_v19 }
 0x282   : > { %1289 = vmatmul.bf16.gmra.mxu1 %v1077_v46 }
 0x283   : > { %v1002_v57 = vpop.f32.mrf.mxu0 }
 0x284   : > { %v1033_v61 = vpack.c.bf16 %v1002_v57, %v1002_v57 }
 0x286   : > { %v1065_v62 = vunpack.c.l.b16 %v1033_v61  ;;  %v1339_v10 = vpop.f32.mrf.mxu2 }
 0x288   : > { %1358 = vmatmul.bf16.vlgmr.msra.gmra.mxu3 %v2625_v58 }
 0x28b   : > { %v1004_v25 = vpop.f32.mrf.mxu0 }
 0x28c   : > { %v1034_v28 = vpack.c.bf16 %v1004_v25, %v1004_v25 }
 0x28e   : > { %v1066_v63 = vunpack.c.l.b16 %v1034_v28  ;;  %v1341_v60 = vpop.f32.mrf.mxu2 }
 0x290   : > { %v1078_v23 = vpack.c.b16 %v1066_v63, %v1065_v62 }
 0x292   : > { %1294 = vmatmul.bf16.gmra.mxu1 %v1078_v23 }
 0x293   : > { %v1007_v31 = vpop.f32.mrf.mxu0 }
 0x294   : > { %v1035_v8 = vpack.c.bf16 %v1007_v31, %v1007_v31 }
 0x296   : > { %v1067_v11 = vunpack.c.l.b16 %v1035_v8  ;;  %v1344_v23 = vpop.f32.mrf.mxu2 }
 0x298   : > { %1363 = vmatmul.bf16.gmra.mxu3 %v2626_v34 }
 0x29b   : > { %v1009_v26 = vpop.f32.mrf.mxu0 }
 0x29c   : > { %v1036_v5 = vpack.c.bf16 %v1009_v26, %v1009_v26 }
 0x29e   : > { %v1068_v14 = vunpack.c.l.b16 %v1036_v5 }
 0x2a0   : > { %v1079_v17 = vpack.c.b16 %v1068_v14, %v1067_v11 }
 0x2a2   : > { %1299 = vmatmul.bf16.gmra.mxu1 %v1079_v17 }
 0x2a3   : > { %v1012_v20 = vpop.f32.mrf.mxu0 }
 0x2a4   : > { %v1037_v38 = vpack.c.bf16 %v1012_v20, %v1012_v20 }
 0x2a6   : > { %v1069_v59 = vunpack.c.l.b16 %v1037_v38  ;;  %v1346_v38 = vpop.f32.mrf.mxu2 }
 0x2ab   : > { %v1014_v41 = vpop.f32.mrf.mxu0 }
 0x2ac   : > { %v1038_v44 = vpack.c.bf16 %v1014_v41, %v1014_v41 }
 0x2ae   : > { %v1070_v47 = vunpack.c.l.b16 %v1038_v44 }
 0x2b0   : > { %v1080_v48 = vpack.c.b16 %v1070_v47, %v1069_v59 }
 0x2b2   : > { %1304 = vmatmul.bf16.gmra.mxu1 %v1080_v48 }
 0x2df   : > { %v1280_v2 = vpop.f32.mrf.mxu1 }
 0x2e0   : > { %v1281_v35 = vadd.f32 %v3398_v32, %v1280_v2 }
 0x2e2   : > { %v1330_v53 = vadd.f32 %v1329_v52, %v1281_v35 }
 0x2e4   : > { %v1369_v1 = vmax.f32 %v1330_v53, 0.0 }
 0x2e7   : > { %v1282_v51 = vpop.f32.mrf.mxu1 }
 0x2e8   : > { %v1283_v50 = vadd.f32 %v3398_v32, %v1282_v51 }
 0x2ea   : > { %v1332_v55 = vadd.f32 %v1331_v29, %v1283_v50  ;;  %v1349_v50 = vpop.f32.mrf.mxu2 }
 0x2eb   : > { %v1310_v56 = vpop.f32.mrf.mxu3 }
 0x2ec   : > { %v1370_v4 = vmax.f32 %v1332_v55, 0.0  ;;  %v1311_v20 = vadd.f32 %v3398_v32, %v1310_v56 }
 0x2ee   : > { %v2718_v37 = vpack.c.bf16 %v1370_v4, %v1369_v1 }
 0x2ef   : > { %v1285_v40 = vpop.f32.mrf.mxu1 }
 0x2f0   : > { %2719 = vst [vmem:[%s3404_s9] sm:$0xff] %v2718_v37   ;;  %v1286_v43 = vadd.f32 %v3398_v32, %v1285_v40 }
 0x2f2   : > { %v1335_v16 = vadd.f32 %v1334_v49, %v1286_v43 }
 0x2f3   : > { %v1312_v7 = vpop.f32.mrf.mxu3 }
 0x2f4   : > { %v1371_v57 = vmax.f32 %v1335_v16, 0.0  ;;  %v1313_v41 = vadd.f32 %v3398_v32, %v1312_v7  ;;  %v1351_v16 = vpop.f32.mrf.mxu2 }
 0x2f7   : > { %v1287_v13 = vpop.f32.mrf.mxu1 }
 0x2f8   : > { %v1288_v19 = vadd.f32 %v3398_v32, %v1287_v13 }
 0x2fa   : > { %v1337_v22 = vadd.f32 %v1336_v54, %v1288_v19 }
 0x2fb   : > { %v1315_v46 = vpop.f32.mrf.mxu3 }
 0x2fc   : > { %v1372_v58 = vmax.f32 %v1337_v22, 0.0  ;;  %v1316_v37 = vadd.f32 %v3398_v32, %v1315_v46 }
 0x2fe   : > { %v2723_v61 = vpack.c.bf16 %v1372_v58, %v1371_v57 }
 0x2ff   : > { %v1290_v25 = vpop.f32.mrf.mxu1 }
 0x300   : > { %2762 = vst [vmem:[%s3404_s9 + $0x8] sm:$0xff] %v2723_v61   ;;  %v1291_v62 = vadd.f32 %v3398_v32, %v1290_v25 }
 0x302   : > { %v1340_v31 = vadd.f32 %v1339_v10, %v1291_v62 }
 0x303   : > { %v1317_v28 = vpop.f32.mrf.mxu3 }
 0x304   : > { %v1373_v5 = vmax.f32 %v1340_v31, 0.0  ;;  %v1318_v40 = vadd.f32 %v3398_v32, %v1317_v28 }
 0x307   : > { %v1292_v63 = vpop.f32.mrf.mxu1 }
 0x308   : > { %v1293_v34 = vadd.f32 %v3398_v32, %v1292_v63  ;;  %v1354_v63 = vpop.f32.mrf.mxu2 }
 0x30a   : > { %v1342_v8 = vadd.f32 %v1341_v60, %v1293_v34 }
 0x30b   : > { %v1359_v26 = vpop.f32.mrf.mxu3 }
 0x30c   : > { %v1374_v11 = vmax.f32 %v1342_v8, 0.0  ;;  %v1360_v44 = vadd.f32 %v1359_v26, %v1311_v20 }
 0x30e   : > { %v2728_v14 = vpack.c.bf16 %v1374_v11, %v1373_v5  ;;  %v1381_v52 = vmax.f32 %v1360_v44, 0.0 }
 0x30f   : > { %v1295_v17 = vpop.f32.mrf.mxu1 }
 0x310   : > { %2763 = vst [vmem:[%s3404_s9 + $0x10] sm:$0xff] %v2728_v14   ;;  %v1296_v47 = vadd.f32 %v3398_v32, %v1295_v17  ;;  %v1356_v5 = vpop.f32.mrf.mxu2 }
 0x312   : > { %v1345_v49 = vadd.f32 %v1344_v23, %v1296_v47 }
 0x313   : > { %v1361_v59 = vpop.f32.mrf.mxu3 }
 0x314   : > { %v1362_v48 = vadd.f32 %v1361_v59, %v1313_v41  ;;  %v1375_v55 = vmax.f32 %v1345_v49, 0.0 }
 0x316   : > { %v1382_v29 = vmax.f32 %v1362_v48, 0.0 }
 0x317   : > { %v1297_v2 = vpop.f32.mrf.mxu1 }
 0x318   : > { %v2748_v35 = vpack.c.bf16 %v1382_v29, %v1381_v52  ;;  %v1298_v51 = vadd.f32 %v3398_v32, %v1297_v2 }
 0x31a   : > { %2767 = vst [vmem:[%s3404_s9 + $0x30] sm:$0xff] %v2748_v35   ;;  %v1347_v53 = vadd.f32 %v1346_v38, %v1298_v51 }
 0x31b   : > { %v1364_v54 = vpop.f32.mrf.mxu3 }
 0x31c   : > { %v1376_v56 = vmax.f32 %v1347_v53, 0.0  ;;  %v1365_v7 = vadd.f32 %v1364_v54, %v1316_v37 }
 0x31e   : > { %v2733_v1 = vpack.c.bf16 %v1376_v56, %v1375_v55  ;;  %v1383_v19 = vmax.f32 %v1365_v7, 0.0 }
 0x31f   : > { %v1300_v4 = vpop.f32.mrf.mxu1 }
 0x320   : > { %2764 = vst [vmem:[%s3404_s9 + $0x18] sm:$0xff] %v2733_v1   ;;  %v1301_v43 = vadd.f32 %v3398_v32, %v1300_v4 }
 0x322   : > { %v1350_v58 = vadd.f32 %v1349_v50, %v1301_v43 }
 0x323   : > { %v1366_v10 = vpop.f32.mrf.mxu3 }
 0x324   : > { %v1367_v13 = vadd.f32 %v1366_v10, %v1318_v40  ;;  %v1377_v46 = vmax.f32 %v1350_v58, 0.0 }
 0x326   : > { %v1384_v22 = vmax.f32 %v1367_v13, 0.0 }
 0x327   : > { %v1302_v57 = vpop.f32.mrf.mxu1 }
 0x328   : > { %v2753_v60 = vpack.c.bf16 %v1384_v22, %v1383_v19  ;;  %v1303_v61 = vadd.f32 %v3398_v32, %v1302_v57 }
 0x32a   : > { %2768 = vst [vmem:[%s3404_s9 + $0x38] sm:$0xff] %v2753_v60   ;;  %v1352_v25 = vadd.f32 %v1351_v16, %v1303_v61 }
 0x32c   : > { %v1378_v62 = vmax.f32 %v1352_v25, 0.0 }
 0x32e   : > { %v2738_v28 = vpack.c.bf16 %v1378_v62, %v1377_v46 }
 0x32f   : > { %v1305_v23 = vpop.f32.mrf.mxu1 }
 0x330   : > { %2765 = vst [vmem:[%s3404_s9 + $0x20] sm:$0xff] %v2738_v28   ;;  %v1306_v31 = vadd.f32 %v3398_v32, %v1305_v23 }
 0x332   : > { %v1355_v8 = vadd.f32 %v1354_v63, %v1306_v31 }
 0x334   : > { %v1379_v14 = vmax.f32 %v1355_v8, 0.0 }
 0x337   : > { %v1307_v34 = vpop.f32.mrf.mxu1 }
 0x338   : > { %v1308_v26 = vadd.f32 %v3398_v32, %v1307_v34 }
 0x33a   : > { %v1357_v11 = vadd.f32 %v1356_v5, %v1308_v26 }
 0x33c   : > { %v1380_v17 = vmax.f32 %v1357_v11, 0.0 }
 0x33e   : > { %v2743_v20 = vpack.c.bf16 %v1380_v17, %v1379_v14 }
 0x340   : > { %2766 = vst [vmem:[%s3404_s9 + $0x28] sm:$0xff] %v2743_v20  }
 0x341 PF: > { %p2389_p12 = scmp.ne.s32.totalorder %s2914_s15, 3 }
 0x342   : > { %s1426_s11 = sshra.s32 (!%p2389_p12), %s2063_s24, 3 }
 0x343   : > { %1425 = sbr.rel (%p2389_p12) target bundleno = 1238 (0x4d6), region = 48  ;;  %s2390_s10 = sshll.u32 (!%p2389_p12), %s1426_s11, 2 }
 0x344   : > { %s3431_s12 = scalar_lea.vmem (!%p2389_p12), [#allocation2], %s2390_s10 }
 0x348   : > { %v2650_v32 = vld [vmem:[%s3431_s12 + $0x38] sm:$0xff]  ;;  %v2649_v38 = vld [vmem:[%s3431_s12 + $0x30] sm:$0xff]  ;;  %v2648_v41 = vld [vmem:[%s3431_s12 + $0x28] sm:$0xff]  ;;  %v2395_v29 = vor.u32 %v2990_v3, %v2973_v0  ;;  %v2419_v2 = vor.u32 %v3195_v39, %v3182_v36  ;;  %v2399_v49 = vor.u32 %v3032_v9, %v3012_v6  ;;  %v2423_v35 = vor.u32 %v3223_v45, %v3210_v42 }
 0x349   : > { %1563 = vmatpush.bf16.msra.mxu0 %v2650_v32  ;;  %2817 = vmatpush.bf16.msra.mxu3 %v2650_v32  ;;  %v2647_v44 = vld [vmem:[%s3431_s12 + $0x20] sm:$0xff]  ;;  %v2646_v59 = vld [vmem:[%s3431_s12 + $0x18] sm:$0xff]  ;;  %v2645_v47 = vld [vmem:[%s3431_s12 + $0x10] sm:$0xff]  ;;  %v2403_v0 = vor.u32 %v3070_v15, %v3053_v12  ;;  %v2407_v3 = vor.u32 %v3101_v21, %v3086_v18  ;;  %v2411_v21 = vor.u32 %v3134_v27, %v3119_v24 }
 0x34a   : > { %v2644_v48 = vld [vmem:[%s3431_s12 + $0x8] sm:$0xff]  ;;  %v2643_v52 = vld [vmem:[%s3431_s12] sm:$0xff]  ;;  %v2674_v36 = vld [vmem:[%s3037_s27 + $0x78] sm:$0xff]  ;;  %v2415_v50 = vor.u32 %v3167_v33, %v3150_v30 }
 0x34b   : > { %v2666_v39 = vld [vmem:[%s3037_s27 + $0x38] sm:$0xff]  ;;  %1905 = vmatpush.bf16.msra.mxu2 %v2674_v36  ;;  %v2673_v6 = vld [vmem:[%s3037_s27 + $0x70] sm:$0xff]  ;;  %v2672_v42 = vld [vmem:[%s3037_s27 + $0x68] sm:$0xff] }
 0x34c   : > { %1856 = vmatpush.bf16.msra.mxu1 %v2666_v39  ;;  %v2665_v9 = vld [vmem:[%s3037_s27 + $0x30] sm:$0xff]  ;;  %v2664_v12 = vld [vmem:[%s3037_s27 + $0x28] sm:$0xff]  ;;  %v2671_v15 = vld [vmem:[%s3037_s27 + $0x60] sm:$0xff] }
 0x34d   : > { %1564 = vmatpush.bf16.msra.mxu0 %v2649_v38  ;;  %2818 = vmatpush.bf16.msra.mxu3 %v2649_v38  ;;  %v2663_v18 = vld [vmem:[%s3037_s27 + $0x20] sm:$0xff]  ;;  %v2670_v45 = vld [vmem:[%s3037_s27 + $0x58] sm:$0xff]  ;;  %v2669_v51 = vld [vmem:[%s3037_s27 + $0x50] sm:$0xff] }
 0x34e   : > { %v2668_v53 = vld [vmem:[%s3037_s27 + $0x48] sm:$0xff]  ;;  %v2662_v54 = vld [vmem:[%s3037_s27 + $0x18] sm:$0xff]  ;;  %v2667_v24 = vld [vmem:[%s3037_s27 + $0x40] sm:$0xff] }
 0x34f   : > { %1906 = vmatpush.bf16.msra.mxu2 %v2673_v6  ;;  %v2651_v27 = vld [vmem:[%s3431_s12] sm:$0xff]  ;;  %v2661_v55 = vld [vmem:[%s3037_s27 + $0x10] sm:$0xff]  ;;  %v2660_v56 = vld [vmem:[%s3037_s27 + $0x8] sm:$0xff] }
 0x350   : > { %1857 = vmatpush.bf16.msra.mxu1 %v2665_v9  ;;  %v2659_v1 = vld [vmem:[%s3037_s27] sm:$0xff]  ;;  %v2652_v30 = vld [vmem:[%s3431_s12 + $0x8] sm:$0xff]  ;;  %v2653_v4 = vld [vmem:[%s3431_s12 + $0x10] sm:$0xff] }
 0x351   : > { %1565 = vmatpush.bf16.msra.mxu0 %v2648_v41  ;;  %2819 = vmatpush.bf16.msra.mxu3 %v2648_v41  ;;  %v2654_v25 = vld [vmem:[%s3431_s12 + $0x18] sm:$0xff]  ;;  %v2655_v32 = vld [vmem:[%s3431_s12 + $0x20] sm:$0xff] }
 0x353   : > { %1907 = vmatpush.bf16.msra.mxu2 %v2672_v42 }
 0x354   : > { %1858 = vmatpush.bf16.msra.mxu1 %v2664_v12 }
 0x355   : > { %1566 = vmatpush.bf16.msra.mxu0 %v2647_v44  ;;  %2820 = vmatpush.bf16.msra.mxu3 %v2647_v44 }
 0x357   : > { %1908 = vmatpush.bf16.msra.mxu2 %v2671_v15 }
 0x358   : > { %1859 = vmatpush.bf16.msra.mxu1 %v2663_v18 }
 0x359   : > { %1567 = vmatpush.bf16.msra.mxu0 %v2646_v59  ;;  %2821 = vmatpush.bf16.msra.mxu3 %v2646_v59 }
 0x35b   : > { %1909 = vmatpush.bf16.msra.mxu2 %v2670_v45 }
 0x35c   : > { %1860 = vmatpush.bf16.msra.mxu1 %v2662_v54 }
 0x35d   : > { %1568 = vmatpush.bf16.msra.mxu0 %v2645_v47  ;;  %2822 = vmatpush.bf16.msra.mxu3 %v2645_v47 }
 0x35f   : > { %1910 = vmatpush.bf16.msra.mxu2 %v2669_v51 }
 0x360   : > { %1861 = vmatpush.bf16.msra.mxu1 %v2661_v55 }
 0x361   : > { %1569 = vmatpush.bf16.msra.mxu0 %v2644_v48  ;;  %2823 = vmatpush.bf16.msra.mxu3 %v2644_v48 }
 0x363   : > { %1911 = vmatpush.bf16.msra.mxu2 %v2668_v53 }
 0x364   : > { %1862 = vmatpush.bf16.msra.mxu1 %v2660_v56 }
 0x365   : > { %1570 = vmatpush.bf16.msra.mxu0 %v2643_v52  ;;  %2824 = vmatpush.bf16.msra.mxu3 %v2643_v52 }
 0x367   : > { %1912 = vmatpush.bf16.msra.mxu2 %v2667_v24 }
 0x368   : > { %1571 = vmatmul.bf16.vlgmr.msra.gmra.mxu0 %v2395_v29  ;;  %1601 = vmatmul.bf16.vlgmr.msra.gmra.mxu3 %v2419_v2  ;;  %v2657_v2 = vld [vmem:[%s3431_s12 + $0x30] sm:$0xff] }
 0x369   : > { %2825 = vmatpush.bf16.msrb.mxu3 %v2666_v39  ;;  %1863 = vmatpush.bf16.msra.mxu1 %v2659_v1 }
 0x36a   : > { %1913 = vmatmul.bf16.vlgmr.msra.gmra.mxu2 %v2651_v27 }
 0x36d   : > { %2826 = vmatpush.bf16.msrb.mxu3 %v2665_v9 }
 0x371   : > { %2827 = vmatpush.bf16.msrb.mxu3 %v2664_v12 }
 0x375   : > { %2828 = vmatpush.bf16.msrb.mxu3 %v2663_v18 }
 0x378   : > { %1576 = vmatmul.bf16.gmra.mxu0 %v2399_v49  ;;  %1606 = vmatmul.bf16.gmra.mxu3 %v2423_v35  ;;  %v2656_v49 = vld [vmem:[%s3431_s12 + $0x28] sm:$0xff] }
 0x379   : > { %2829 = vmatpush.bf16.msrb.mxu3 %v2662_v54 }
 0x37a   : > { %1918 = vmatmul.bf16.gmra.mxu2 %v2652_v30 }
 0x37d   : > { %2830 = vmatpush.bf16.msrb.mxu3 %v2661_v55 }
 0x381   : > { %2831 = vmatpush.bf16.msrb.mxu3 %v2660_v56 }
 0x385   : > { %2832 = vmatpush.bf16.msrb.mxu3 %v2659_v1 }
 0x388   : > { %1581 = vmatmul.bf16.gmra.mxu0 %v2403_v0 }
 0x389   : > { %2833 = vmatpush.bf16.msra.mxu3 %v2674_v36 }
 0x38a   : > { %1923 = vmatmul.bf16.gmra.mxu2 %v2653_v4 }
 0x38d   : > { %2834 = vmatpush.bf16.msra.mxu3 %v2673_v6 }
 0x391   : > { %2835 = vmatpush.bf16.msra.mxu3 %v2672_v42  ;;  %v2658_v42 = vld [vmem:[%s3431_s12 + $0x38] sm:$0xff] }
 0x395   : > { %2836 = vmatpush.bf16.msra.mxu3 %v2671_v15 }
 0x398   : > { %1586 = vmatmul.bf16.gmra.mxu0 %v2407_v3 }
 0x399   : > { %2837 = vmatpush.bf16.msra.mxu3 %v2670_v45 }
 0x39a   : > { %1928 = vmatmul.bf16.gmra.mxu2 %v2654_v25 }
 0x39d   : > { %2838 = vmatpush.bf16.msra.mxu3 %v2669_v51 }
 0x3a1   : > { %2839 = vmatpush.bf16.msra.mxu3 %v2668_v53 }
 0x3a5   : > { %2840 = vmatpush.bf16.msra.mxu3 %v2667_v24 }
 0x3a8   : > { %1591 = vmatmul.bf16.gmra.mxu0 %v2411_v21 }
 0x3aa   : > { %1933 = vmatmul.bf16.gmra.mxu2 %v2655_v32 }
 0x3b8   : > { %1596 = vmatmul.bf16.gmra.mxu0 %v2415_v50 }
 0x3ba   : > { %1938 = vmatmul.bf16.gmra.mxu2 %v2656_v49 }
 0x3e5   : > { %v1572_v33 = vpop.f32.mrf.mxu0 }
 0x3e6   : > { %v1612_v40 = vpack.c.bf16 %v1572_v33, %v1572_v33  ;;  %v3482_v33 = vld [vmem:[%s3022_s20] ss:$0 sm:$0xff] }
 0x3e8   : > { %v1644_v43 = vunpack.c.l.b16 %v1612_v40 }
 0x3eb   : > { %v1602_v37 = vpop.f32.mrf.mxu3 }
 0x3ec   : > { %v1624_v13 = vpack.c.bf16 %v1602_v37, %v1602_v37 }
 0x3ed   : > { %v1574_v7 = vpop.f32.mrf.mxu0  ;;  %v1914_v1 = vpop.f32.mrf.mxu2 }
 0x3ee   : > { %v1613_v10 = vpack.c.bf16 %v1574_v7, %v1574_v7  ;;  %v1656_v57 = vunpack.c.l.b16 %v1624_v13 }
 0x3f0   : > { %v1645_v16 = vunpack.c.l.b16 %v1613_v10 }
 0x3f2   : > { %v1660_v19 = vpack.c.b16 %v1645_v16, %v1644_v43 }
 0x3f3   : > { %v1604_v22 = vpop.f32.mrf.mxu3 }
 0x3f4   : > { %v1625_v58 = vpack.c.bf16 %v1604_v22, %v1604_v22  ;;  %1864 = vmatmul.bf16.vlgmr.msra.gmra.mxu1 %v1660_v19 }
 0x3f5   : > { %v1577_v60 = vpop.f32.mrf.mxu0  ;;  %v1916_v30 = vpop.f32.mrf.mxu2 }
 0x3f6   : > { %v1657_v61 = vunpack.c.l.b16 %v1625_v58  ;;  %v1614_v28 = vpack.c.bf16 %v1577_v60, %v1577_v60 }
 0x3f8   : > { %v1666_v46 = vpack.c.b16 %v1657_v61, %v1656_v57  ;;  %v1646_v31 = vunpack.c.l.b16 %v1614_v28 }
 0x3fa   : > { %1894 = vmatmul.bf16.vlgmr.msrb.gmra.mxu3 %v1666_v46 }
 0x3fb   : > { %v1607_v62 = vpop.f32.mrf.mxu3 }
 0x3fc   : > { %v1626_v34 = vpack.c.bf16 %v1607_v62, %v1607_v62 }
 0x3fd   : > { %v1579_v63 = vpop.f32.mrf.mxu0  ;;  %v1919_v37 = vpop.f32.mrf.mxu2 }
 0x3fe   : > { %v1615_v23 = vpack.c.bf16 %v1579_v63, %v1579_v63  ;;  %v1658_v11 = vunpack.c.l.b16 %v1626_v34 }
 0x400   : > { %v1647_v8 = vunpack.c.l.b16 %v1615_v23 }
 0x402   : > { %v1661_v26 = vpack.c.b16 %v1647_v8, %v1646_v31 }
 0x403   : > { %v1609_v5 = vpop.f32.mrf.mxu3 }
 0x404   : > { %v1627_v14 = vpack.c.bf16 %v1609_v5, %v1609_v5  ;;  %1869 = vmatmul.bf16.gmra.mxu1 %v1661_v26 }
 0x405   : > { %v1582_v17 = vpop.f32.mrf.mxu0  ;;  %v1921_v13 = vpop.f32.mrf.mxu2 }
 0x406   : > { %v1659_v20 = vunpack.c.l.b16 %v1627_v14  ;;  %v1616_v41 = vpack.c.bf16 %v1582_v17, %v1582_v17 }
 0x408   : > { %v1667_v38 = vpack.c.b16 %v1659_v20, %v1658_v11  ;;  %v1648_v47 = vunpack.c.l.b16 %v1616_v41 }
 0x40a   : > { %1899 = vmatmul.bf16.gmra.mxu3 %v1667_v38 }
 0x40d   : > { %v1584_v44 = vpop.f32.mrf.mxu0  ;;  %v1924_v46 = vpop.f32.mrf.mxu2 }
 0x40e   : > { %v1617_v59 = vpack.c.bf16 %v1584_v44, %v1584_v44 }
 0x410   : > { %v1649_v48 = vunpack.c.l.b16 %v1617_v59 }
 0x412   : > { %v1662_v52 = vpack.c.b16 %v1649_v48, %v1648_v47 }
 0x414   : > { %1874 = vmatmul.bf16.gmra.mxu1 %v1662_v52 }
 0x415   : > { %v1587_v29 = vpop.f32.mrf.mxu0  ;;  %v1926_v34 = vpop.f32.mrf.mxu2 }
 0x416   : > { %v1618_v35 = vpack.c.bf16 %v1587_v29, %v1587_v29 }
 0x418   : > { %v1650_v36 = vunpack.c.l.b16 %v1618_v35 }
 0x41a   : > { %1943 = vmatmul.bf16.vlgmr.msra.gmra.mxu3 %v2657_v2 }
 0x41d   : > { %v1589_v0 = vpop.f32.mrf.mxu0  ;;  %v1929_v20 = vpop.f32.mrf.mxu2 }
 0x41e   : > { %v1619_v3 = vpack.c.bf16 %v1589_v0, %v1589_v0 }
 0x420   : > { %v1651_v39 = vunpack.c.l.b16 %v1619_v3 }
 0x422   : > { %v1663_v6 = vpack.c.b16 %v1651_v39, %v1650_v36 }
 0x424   : > { %1879 = vmatmul.bf16.gmra.mxu1 %v1663_v6 }
 0x425   : > { %v1592_v9 = vpop.f32.mrf.mxu0  ;;  %v1931_v29 = vpop.f32.mrf.mxu2 }
 0x426   : > { %v1620_v12 = vpack.c.bf16 %v1592_v9, %v1592_v9 }
 0x428   : > { %v1652_v21 = vunpack.c.l.b16 %v1620_v12 }
 0x42a   : > { %1948 = vmatmul.bf16.gmra.mxu3 %v2658_v42 }
 0x42d   : > { %v1594_v15 = vpop.f32.mrf.mxu0 }
 0x42e   : > { %v1621_v18 = vpack.c.bf16 %v1594_v15, %v1594_v15  ;;  %v1934_v15 = vpop.f32.mrf.mxu2 }
 0x430   : > { %v1653_v45 = vunpack.c.l.b16 %v1621_v18 }
 0x432   : > { %v1664_v51 = vpack.c.b16 %v1653_v45, %v1652_v21 }
 0x434   : > { %1884 = vmatmul.bf16.gmra.mxu1 %v1664_v51 }
 0x435   : > { %v1597_v53 = vpop.f32.mrf.mxu0 }
 0x436   : > { %v1622_v50 = vpack.c.bf16 %v1597_v53, %v1597_v53 }
 0x438   : > { %v1654_v27 = vunpack.c.l.b16 %v1622_v50 }
 0x43d   : > { %v1599_v54 = vpop.f32.mrf.mxu0 }
 0x43e   : > { %v1623_v24 = vpack.c.bf16 %v1599_v54, %v1599_v54 }
 0x440   : > { %v1655_v55 = vunpack.c.l.b16 %v1623_v24 }
 0x442   : > { %v1665_v56 = vpack.c.b16 %v1655_v55, %v1654_v27 }
 0x444   : > { %1889 = vmatmul.bf16.gmra.mxu1 %v1665_v56 }
 0x471   : > { %v1865_v4 = vpop.f32.mrf.mxu1 }
 0x472   : > { %v1866_v40 = vadd.f32 %v3482_v33, %v1865_v4 }
 0x474   : > { %v1915_v7 = vadd.f32 %v1914_v1, %v1866_v40  ;;  %v1936_v1 = vpop.f32.mrf.mxu2 }
 0x476   : > { %2868 = vtanh.f32 %v1915_v7 }
 0x479   : > { %v1867_v10 = vpop.f32.mrf.mxu1 }
 0x47a   : > { %v1868_v43 = vadd.f32 %v3482_v33, %v1867_v10 }
 0x47c   : > { %v2869_v16 = vpop.eup %2868  ;;  %v1917_v19 = vadd.f32 %v1916_v30, %v1868_v43  ;;  %v1939_v10 = vpop.f32.mrf.mxu2 }
 0x47d   : > { %1971 = vst [vmem:[%s3561_s4] sm:$0xff] %v2869_v16  ;;  %v1895_v22 = vpop.f32.mrf.mxu3 }
 0x47e   : > { %2870 = vtanh.f32 %v1917_v19  ;;  %v1896_v41 = vadd.f32 %v3482_v33, %v1895_v22 }
 0x481   : > { %v1870_v57 = vpop.f32.mrf.mxu1 }
 0x482   : > { %v1871_v58 = vadd.f32 %v3482_v33, %v1870_v57 }
 0x484   : > { %v2871_v60 = vpop.eup %2870  ;;  %v1920_v61 = vadd.f32 %v1919_v37, %v1871_v58  ;;  %v1941_v58 = vpop.f32.mrf.mxu2 }
 0x485   : > { %1972 = vst [vmem:[%s3561_s4 + $0x8] sm:$0xff] %v2871_v60  ;;  %v1897_v25 = vpop.f32.mrf.mxu3 }
 0x486   : > { %2872 = vtanh.f32 %v1920_v61  ;;  %v1898_v49 = vadd.f32 %v3482_v33, %v1897_v25 }
 0x489   : > { %v1872_v62 = vpop.f32.mrf.mxu1 }
 0x48a   : > { %v1873_v28 = vadd.f32 %v3482_v33, %v1872_v62 }
 0x48c   : > { %v2873_v63 = vpop.eup %2872  ;;  %v1922_v23 = vadd.f32 %v1921_v13, %v1873_v28 }
 0x48d   : > { %1973 = vst [vmem:[%s3561_s4 + $0x10] sm:$0xff] %v2873_v63  ;;  %v1900_v31 = vpop.f32.mrf.mxu3 }
 0x48e   : > { %2874 = vtanh.f32 %v1922_v23  ;;  %v1901_v42 = vadd.f32 %v3482_v33, %v1900_v31 }
 0x491   : > { %v1875_v8 = vpop.f32.mrf.mxu1 }
 0x492   : > { %v1876_v26 = vadd.f32 %v3482_v33, %v1875_v8 }
 0x494   : > { %v2875_v5 = vpop.eup %2874  ;;  %v1925_v11 = vadd.f32 %v1924_v46, %v1876_v26 }
 0x495   : > { %1974 = vst [vmem:[%s3561_s4 + $0x18] sm:$0xff] %v2875_v5  ;;  %v1902_v14 = vpop.f32.mrf.mxu3 }
 0x496   : > { %2876 = vtanh.f32 %v1925_v11  ;;  %v1903_v54 = vadd.f32 %v3482_v33, %v1902_v14 }
 0x499   : > { %v1877_v17 = vpop.f32.mrf.mxu1 }
 0x49a   : > { %v1878_v32 = vadd.f32 %v3482_v33, %v1877_v17 }
 0x49c   : > { %v2877_v38 = vpop.eup %2876  ;;  %v1927_v44 = vadd.f32 %v1926_v34, %v1878_v32 }
 0x49d   : > { %1975 = vst [vmem:[%s3561_s4 + $0x20] sm:$0xff] %v2877_v38  ;;  %v1944_v59 = vpop.f32.mrf.mxu3 }
 0x49e   : > { %2878 = vtanh.f32 %v1927_v44  ;;  %v1945_v47 = vadd.f32 %v1944_v59, %v1896_v41 }
 0x4a0   : > { %2880 = vtanh.f32 %v1945_v47 }
 0x4a1   : > { %v1880_v48 = vpop.f32.mrf.mxu1 }
 0x4a2   : > { %v1881_v52 = vadd.f32 %v3482_v33, %v1880_v48 }
 0x4a4   : > { %v2879_v2 = vpop.eup %2878  ;;  %v1930_v35 = vadd.f32 %v1929_v20, %v1881_v52 }
 0x4a5   : > { %1976 = vst [vmem:[%s3561_s4 + $0x28] sm:$0xff] %v2879_v2  ;;  %v1946_v0 = vpop.f32.mrf.mxu3 }
 0x4a6   : > { %v2881_v3 = vpop.eup %2880  ;;  %2882 = vtanh.f32 %v1930_v35  ;;  %v1947_v36 = vadd.f32 %v1946_v0, %v1898_v49 }
 0x4a7   : > { %1983 = vst [vmem:[%s3561_s4 + $0x60] sm:$0xff] %v2881_v3 }
 0x4a8   : > { %2884 = vtanh.f32 %v1947_v36 }
 0x4a9   : > { %v1882_v39 = vpop.f32.mrf.mxu1 }
 0x4aa   : > { %v1883_v6 = vadd.f32 %v3482_v33, %v1882_v39 }
 0x4ac   : > { %v2883_v9 = vpop.eup %2882  ;;  %v1932_v12 = vadd.f32 %v1931_v29, %v1883_v6 }
 0x4ad   : > { %1977 = vst [vmem:[%s3561_s4 + $0x30] sm:$0xff] %v2883_v9  ;;  %v1949_v18 = vpop.f32.mrf.mxu3 }
 0x4ae   : > { %v2885_v21 = vpop.eup %2884  ;;  %2886 = vtanh.f32 %v1932_v12  ;;  %v1950_v45 = vadd.f32 %v1949_v18, %v1901_v42 }
 0x4af   : > { %1984 = vst [vmem:[%s3561_s4 + $0x68] sm:$0xff] %v2885_v21 }
 0x4b0   : > { %2888 = vtanh.f32 %v1950_v45 }
 0x4b1   : > { %v1885_v51 = vpop.f32.mrf.mxu1 }
 0x4b2   : > { %v1886_v53 = vadd.f32 %v3482_v33, %v1885_v51 }
 0x4b4   : > { %v2887_v50 = vpop.eup %2886  ;;  %v1935_v24 = vadd.f32 %v1934_v15, %v1886_v53 }
 0x4b5   : > { %1978 = vst [vmem:[%s3561_s4 + $0x38] sm:$0xff] %v2887_v50  ;;  %v1951_v27 = vpop.f32.mrf.mxu3 }
 0x4b6   : > { %v2889_v55 = vpop.eup %2888  ;;  %2890 = vtanh.f32 %v1935_v24  ;;  %v1952_v56 = vadd.f32 %v1951_v27, %v1903_v54 }
 0x4b7   : > { %1985 = vst [vmem:[%s3561_s4 + $0x70] sm:$0xff] %v2889_v55 }
 0x4b8   : > { %2892 = vtanh.f32 %v1952_v56 }
 0x4b9   : > { %v1887_v30 = vpop.f32.mrf.mxu1 }
 0x4ba   : > { %v1888_v4 = vadd.f32 %v3482_v33, %v1887_v30 }
 0x4bc   : > { %v2891_v37 = vpop.eup %2890  ;;  %v1937_v40 = vadd.f32 %v1936_v1, %v1888_v4 }
 0x4bd   : > { %1979 = vst [vmem:[%s3561_s4 + $0x40] sm:$0xff] %v2891_v37 }
 0x4be   : > { %v2893_v7 = vpop.eup %2892  ;;  %2894 = vtanh.f32 %v1937_v40 }
 0x4bf   : > { %1986 = vst [vmem:[%s3561_s4 + $0x78] sm:$0xff] %v2893_v7 }
 0x4c1   : > { %v1890_v43 = vpop.f32.mrf.mxu1 }
 0x4c2   : > { %v1891_v13 = vadd.f32 %v3482_v33, %v1890_v43 }
 0x4c4   : > { %v2895_v16 = vpop.eup %2894  ;;  %v1940_v19 = vadd.f32 %v1939_v10, %v1891_v13 }
 0x4c5   : > { %1980 = vst [vmem:[%s3561_s4 + $0x48] sm:$0xff] %v2895_v16 }
 0x4c6   : > { %2896 = vtanh.f32 %v1940_v19 }
 0x4c9   : > { %v1892_v22 = vpop.f32.mrf.mxu1 }
 0x4ca   : > { %v1893_v57 = vadd.f32 %v3482_v33, %v1892_v22 }
 0x4cc   : > { %v2897_v60 = vpop.eup %2896  ;;  %v1942_v61 = vadd.f32 %v1941_v58, %v1893_v57 }
 0x4cd   : > { %1981 = vst [vmem:[%s3561_s4 + $0x50] sm:$0xff] %v2897_v60 }
 0x4ce   : > { %2898 = vtanh.f32 %v1942_v61 }
 0x4d4   : > { %v2899_v25 = vpop.eup %2898 }
 0x4d5   : > { %1982 = vst [vmem:[%s3561_s4 + $0x58] sm:$0xff] %v2899_v25 }
 0x4d6 PF: > { %s14_s17 = sadd.s32 1, %s2922_s17   ;;  %s3562_s15 = smov %s2918_s16 }
 0x4d7   : > { %p11_p13 = scmp.ge.s32.totalorder %s14_s17, 6   ;;  %s3563_s16 = smov %s3565_s18 }
 0x4d9   :  { %13 = sbr.rel (!%p11_p13) target bundleno = 2 (0x2), region = 86 }

</bundles_post_ra>
